<compile_context>
chip_gen: v6e
topology: v6e:2x2x1
jax: 0.10.0
libtpu: 0.0.40
codegen_flags: <defaults>
</compile_context>

<pallas_src>
import jax
import jax.numpy as jnp
from jax import lax
from jax.experimental import pallas as pl
from jax.experimental.pallas import tpu as pltpu


def _round_up(x, m):
    return (x + m - 1) // m * m


# ----------------------------------------------------------------------------
# Fused Group kernel (one batch-group of images per grid step)
# ----------------------------------------------------------------------------
def _make_group_kernel(H, W, C, K, blocks, lanes, krows):
    KK = K * K
    pad = K // 2
    offsets = [(dy - pad, dx - pad) for dy in range(K) for dx in range(K)]
    tail_rows = krows - KK * C            # >= 1: row 0 is the bias "ones" row,
                                          # remaining rows are zero padding.

    def kernel(x_ref, w_ref, m_ref, o_ref):
        # x_ref : (1, C, LANES)   channel-first, spatially/batch flattened
        # w_ref : (L, C, KROWS)   lane-dense weight slabs (bias folded in)
        # m_ref : (KK, LANES)     precomputed boundary masks (f32)
        # o_ref : (1, C, LANES)
        x0 = x_ref[0]                                     # (C, LANES) f32

        # Constant tail: ones row (multiplies the bias column) + zero pad rows.
        row_id = lax.broadcasted_iota(jnp.int32, (tail_rows, lanes), 0)
        tail = (row_id == 0).astype(jnp.float32)          # (tail_rows, LANES)

        def conv(inp, layer, relu):
            # Build the stacked RHS: for every kernel tap, a lane-rotated copy
            # of the input with out-of-image positions zeroed by the mask.
            rows = []
            for t, (oy, ox) in enumerate(offsets):
                s = oy * W + ox                           # flat spatial shift
                if s == 0:                                # center tap
                    rows.append(inp)
                else:
                    shifted = pltpu.roll(inp, (-s) % lanes, axis=1)
                    rows.append(shifted * m_ref[pl.ds(t, 1), :])
            rows.append(tail)
            rhs = jnp.concatenate(rows, axis=0)           # (KROWS, LANES)
            acc = jnp.dot(w_ref[layer], rhs,
                          preferred_element_type=jnp.float32)  # (C, LANES)
            if relu:
                acc = jnp.maximum(acc, 0.0)
            return acc

        y = x0
        for blk in range(blocks):
            mid = conv(y, 2 * blk, relu=True) + y         # relu(conv1(x)) + x
            # TODO(synk): unetBlock is not defined in the provided source
            #             snippet; treated as identity (reference matches).
            y = conv(mid, 2 * blk + 1, relu=False) + y    # conv2(.) + x
        y = conv(y, 2 * blocks, relu=False) + x0          # final conv + group res
        o_ref[0] = y.astype(o_ref.dtype)

    return kernel


# ----------------------------------------------------------------------------
# Wrapper
# ----------------------------------------------------------------------------
def group_forward(x_nchw, ws_oihw, biases, *, ksize, blocks,
                  images_per_step=None):
    """Fused Group forward.

    x_nchw  : (N, C, H, W)  float32
    ws_oihw : (L, Cout, Cin, K, K), L = 2*blocks + 1, layer order
              [blk0.conv1, blk0.conv2, blk1.conv1, blk1.conv2, ..., final_conv]
    biases  : (L, Cout)
    images_per_step : images folded into the lane axis per grid step.
              Default (None) folds the whole batch into one step — best on
              single-TC v5e/v6e.  On v7x pass N//2 so its two TensorCores each
              take half the batch via the "parallel" grid axis.
    """
    N, C, H, W = x_nchw.shape
    HW = H * W
    K = ksize
    KK = K * K
    L = 2 * blocks + 1
    assert ws_oihw.shape == (L, C, C, K, K) and biases.shape == (L, C)

    if images_per_step is None:
        images_per_step = N
    assert N % images_per_step == 0
    G = N // images_per_step
    LANES = images_per_step * HW
    KROWS = _round_up(KK * C + 1, 8)      # taps + bias row, padded to 8 rows

    # ---- host-side layout prep (tiny, outside the kernel) -------------------
    # Activations: (N,C,H,W) -> (G, C, images_per_step*HW), images concatenated
    # along the lane axis (image-major).
    x_folded = (x_nchw.reshape(G, images_per_step, C, HW)
                .transpose(0, 2, 1, 3)
                .reshape(G, C, LANES).astype(jnp.float32))

    # Weights: (L,O,I,kh,kw) -> lane-dense (L, Cout, KROWS); column index
    # (kh*K+kw)*Cin + cin matches the RHS row order; column KK*Cin = bias,
    # remaining columns zero.
    w_t = jnp.transpose(ws_oihw, (0, 1, 3, 4, 2)).reshape(L, C, KK * C)
    w_slab = jnp.concatenate(
        [w_t.astype(jnp.float32),
         biases.reshape(L, C, 1).astype(jnp.float32),
         jnp.zeros((L, C, KROWS - KK * C - 1), jnp.float32)],
        axis=-1)                                           # (L, C, KROWS)

    # Boundary masks (implicit zero padding), per-image periodic along lanes.
    pad = K // 2
    pos = jnp.arange(HW)
    yi, xi = pos // W, pos % W
    mask_rows = []
    for dy in range(K):
        for dx in range(K):
            oy, ox = dy - pad, dx - pad
            valid = ((yi + oy >= 0) & (yi + oy < H) &
                     (xi + ox >= 0) & (xi + ox < W))
            mask_rows.append(valid.astype(jnp.float32))
    masks = jnp.tile(jnp.stack(mask_rows), (1, images_per_step))  # (KK, LANES)

    kernel = _make_group_kernel(H, W, C, K, blocks, LANES, KROWS)

    flops = 2 * G * L * C * KROWS * LANES
    bytes_accessed = 4 * (2 * G * C * LANES + L * C * KROWS + KK * LANES)

    out = pl.pallas_call(
        kernel,
        out_shape=jax.ShapeDtypeStruct((G, C, LANES), jnp.float32),
        grid=(G,),
        in_specs=[
            pl.BlockSpec((1, C, LANES), lambda g: (g, 0, 0)),
            pl.BlockSpec((L, C, KROWS), lambda g: (0, 0, 0)),
            pl.BlockSpec((KK, LANES), lambda g: (0, 0)),
        ],
        out_specs=pl.BlockSpec((1, C, LANES), lambda g: (g, 0, 0)),
        compiler_params=pltpu.CompilerParams(
            dimension_semantics=("parallel",)),
        cost_estimate=pl.CostEstimate(flops=flops, transcendentals=0,
                                      bytes_accessed=bytes_accessed),
    )(x_folded, w_slab, masks)

    return (out.reshape(G, C, images_per_step, HW)
            .transpose(0, 2, 1, 3)
            .reshape(N, C, H, W))


# ----------------------------------------------------------------------------
# Pure-JAX reference (correctness check only)
# ----------------------------------------------------------------------------
def _conv_ref(x_nchw, w_oihw, b, ksize):
    p = ksize // 2
    y = lax.conv_general_dilated(
        x_nchw, w_oihw, (1, 1), [(p, p), (p, p)],
        dimension_numbers=("NCHW", "OIHW", "NCHW"))
    return y + b.reshape(1, -1, 1, 1)


def group_forward_ref(x, ws_oihw, bs, ksize, blocks):
    y = x
    for blk in range(blocks):
        t = jnp.maximum(_conv_ref(y, ws_oihw[2 * blk], bs[2 * blk], ksize), 0.0) + y
        y = _conv_ref(t, ws_oihw[2 * blk + 1], bs[2 * blk + 1], ksize) + y  # unetBlock == identity
    y = _conv_ref(y, ws_oihw[2 * blocks], bs[2 * blocks], ksize) + x
    return y


# ----------------------------------------------------------------------------
if __name__ == "__main__":
    # Shapes consistent with the module: N=2, dim=4, 16x16, k=3, blocks=2
    N, DIM, HWIMG, KSIZE, BLOCKS = 2, 4, 16, 3, 2
    L = 2 * BLOCKS + 1

    key = jax.random.PRNGKey(0)
    key, kx, kw, kb = jax.random.split(key, 4)
    x = jax.random.normal(kx, (N, DIM, HWIMG, HWIMG), dtype=jnp.float32)   # NCHW
    ws = 0.1 * jax.random.normal(kw, (L, DIM, DIM, KSIZE, KSIZE), jnp.float32)
    bs = 0.05 * jax.random.normal(kb, (L, DIM), jnp.float32)

    out = group_forward(x, ws, bs, ksize=KSIZE, blocks=BLOCKS)
    out = jax.block_until_ready(out)

    ref = group_forward_ref(x, ws, bs, KSIZE, BLOCKS)
    ref = jax.block_until_ready(ref)

    assert out.shape == x.shape and out.dtype == jnp.float32
    err = float(jnp.max(jnp.abs(out - ref)))
    assert err < 1e-4, f"mismatch vs reference: {err}"

    print("KERNEL_OK")
</pallas_src>

<mosaic_0001>
module attributes {stable_mosaic.version = 11 : i64} {
  func.func @kernel(%arg0: i32, %arg1: memref<1x4x512xf32, #tpu.memory_space<vmem>>, %arg2: memref<5x4x40xf32, #tpu.memory_space<vmem>>, %arg3: memref<9x512xf32, #tpu.memory_space<vmem>>, %arg4: memref<1x4x512xf32, #tpu.memory_space<vmem>>) attributes {dimension_semantics = [#tpu.dimension_semantics<parallel>], iteration_bounds = array<i64: 1>, scalar_prefetch = 0 : i64, scratch_operands = 0 : i64, tpu.core_type = #tpu.core_type<tc>, window_params = [{transform_indices = @transform_0, window_bounds = array<i64: 1, 4, 512>}, {pipeline_mode = #tpu.pipeline_mode<synchronous>, transform_indices = @transform_1, window_bounds = array<i64: 5, 4, 40>}, {pipeline_mode = #tpu.pipeline_mode<synchronous>, transform_indices = @transform_2, window_bounds = array<i64: 9, 512>}, {transform_indices = @transform_3, window_bounds = array<i64: 1, 4, 512>}]} {
    %c0 = arith.constant 0 : index
    %c0_0 = arith.constant 0 : index
    %c0_1 = arith.constant 0 : index
    %0 = vector.load %arg1[%c0, %c0_0, %c0_1] : memref<1x4x512xf32, #tpu.memory_space<vmem>>, vector<1x4x512xf32>
    %1 = vector.shape_cast %0 : vector<1x4x512xf32> to vector<4x512xf32>
    %2 = tpu.iota {dimensions = array<i32: 0>} : vector<4x512xi32>
    %c0_i32 = arith.constant 0 : i32
    %3 = vector.broadcast %c0_i32 : i32 to vector<4x512xi32>
    %4 = arith.cmpi eq, %2, %3 : vector<4x512xi32>
    %5 = arith.extui %4 : vector<4x512xi1> to vector<4x512xi32>
    %6 = arith.sitofp %5 : vector<4x512xi32> to vector<4x512xf32>
    %c17_i32 = arith.constant 17 : i32
    %7 = tpu.dynamic_rotate %1 by %c17_i32 dim 1 : vector<4x512xf32>, i32 -> vector<4x512xf32>
    %c0_2 = arith.constant 0 : index
    %c0_3 = arith.constant 0 : index
    %8 = vector.load %arg3[%c0_2, %c0_3] : memref<9x512xf32, #tpu.memory_space<vmem>>, vector<1x512xf32>
    %9 = vector.broadcast %8 : vector<1x512xf32> to vector<4x512xf32>
    %10 = arith.mulf %7, %9 : vector<4x512xf32>
    %c16_i32 = arith.constant 16 : i32
    %11 = tpu.dynamic_rotate %1 by %c16_i32 dim 1 : vector<4x512xf32>, i32 -> vector<4x512xf32>
    %c1 = arith.constant 1 : index
    %c0_4 = arith.constant 0 : index
    %12 = vector.load %arg3[%c1, %c0_4] : memref<9x512xf32, #tpu.memory_space<vmem>>, vector<1x512xf32>
    %13 = vector.broadcast %12 : vector<1x512xf32> to vector<4x512xf32>
    %14 = arith.mulf %11, %13 : vector<4x512xf32>
    %c15_i32 = arith.constant 15 : i32
    %15 = tpu.dynamic_rotate %1 by %c15_i32 dim 1 : vector<4x512xf32>, i32 -> vector<4x512xf32>
    %c2 = arith.constant 2 : index
    %c0_5 = arith.constant 0 : index
    %16 = vector.load %arg3[%c2, %c0_5] : memref<9x512xf32, #tpu.memory_space<vmem>>, vector<1x512xf32>
    %17 = vector.broadcast %16 : vector<1x512xf32> to vector<4x512xf32>
    %18 = arith.mulf %15, %17 : vector<4x512xf32>
    %c1_i32 = arith.constant 1 : i32
    %19 = tpu.dynamic_rotate %1 by %c1_i32 dim 1 : vector<4x512xf32>, i32 -> vector<4x512xf32>
    %c3 = arith.constant 3 : index
    %c0_6 = arith.constant 0 : index
    %20 = vector.load %arg3[%c3, %c0_6] : memref<9x512xf32, #tpu.memory_space<vmem>>, vector<1x512xf32>
    %21 = vector.broadcast %20 : vector<1x512xf32> to vector<4x512xf32>
    %22 = arith.mulf %19, %21 : vector<4x512xf32>
    %c511_i32 = arith.constant 511 : i32
    %23 = tpu.dynamic_rotate %1 by %c511_i32 dim 1 : vector<4x512xf32>, i32 -> vector<4x512xf32>
    %c5 = arith.constant 5 : index
    %c0_7 = arith.constant 0 : index
    %24 = vector.load %arg3[%c5, %c0_7] : memref<9x512xf32, #tpu.memory_space<vmem>>, vector<1x512xf32>
    %25 = vector.broadcast %24 : vector<1x512xf32> to vector<4x512xf32>
    %26 = arith.mulf %23, %25 : vector<4x512xf32>
    %c497_i32 = arith.constant 497 : i32
    %27 = tpu.dynamic_rotate %1 by %c497_i32 dim 1 : vector<4x512xf32>, i32 -> vector<4x512xf32>
    %c6 = arith.constant 6 : index
    %c0_8 = arith.constant 0 : index
    %28 = vector.load %arg3[%c6, %c0_8] : memref<9x512xf32, #tpu.memory_space<vmem>>, vector<1x512xf32>
    %29 = vector.broadcast %28 : vector<1x512xf32> to vector<4x512xf32>
    %30 = arith.mulf %27, %29 : vector<4x512xf32>
    %c496_i32 = arith.constant 496 : i32
    %31 = tpu.dynamic_rotate %1 by %c496_i32 dim 1 : vector<4x512xf32>, i32 -> vector<4x512xf32>
    %c7 = arith.constant 7 : index
    %c0_9 = arith.constant 0 : index
    %32 = vector.load %arg3[%c7, %c0_9] : memref<9x512xf32, #tpu.memory_space<vmem>>, vector<1x512xf32>
    %33 = vector.broadcast %32 : vector<1x512xf32> to vector<4x512xf32>
    %34 = arith.mulf %31, %33 : vector<4x512xf32>
    %c495_i32 = arith.constant 495 : i32
    %35 = tpu.dynamic_rotate %1 by %c495_i32 dim 1 : vector<4x512xf32>, i32 -> vector<4x512xf32>
    %c8 = arith.constant 8 : index
    %c0_10 = arith.constant 0 : index
    %36 = vector.load %arg3[%c8, %c0_10] : memref<9x512xf32, #tpu.memory_space<vmem>>, vector<1x512xf32>
    %37 = vector.broadcast %36 : vector<1x512xf32> to vector<4x512xf32>
    %38 = arith.mulf %35, %37 : vector<4x512xf32>
    %39 = tpu.concatenate %10, %14, %18, %22, %1, %26, %30, %34, %38, %6 in 0 : vector<4x512xf32>, vector<4x512xf32>, vector<4x512xf32>, vector<4x512xf32>, vector<4x512xf32>, vector<4x512xf32>, vector<4x512xf32>, vector<4x512xf32>, vector<4x512xf32>, vector<4x512xf32> -> vector<40x512xf32>
    %c0_11 = arith.constant 0 : index
    %c0_12 = arith.constant 0 : index
    %c0_13 = arith.constant 0 : index
    %40 = vector.load %arg2[%c0_11, %c0_12, %c0_13] : memref<5x4x40xf32, #tpu.memory_space<vmem>>, vector<1x4x40xf32>
    %41 = vector.shape_cast %40 : vector<1x4x40xf32> to vector<4x40xf32>
    %cst = arith.constant dense<0.000000e+00> : vector<4x512xf32>
    %42 = tpu.matmul %41, %39, %cst {dimension_numbers = #tpu.dot_dimension_numbers<[1], [0], [0], [1], [0, 0, 1, 1], [], []>} : vector<4x40xf32>, vector<40x512xf32>, vector<4x512xf32> -> vector<4x512xf32>
    %cst_14 = arith.constant 0.000000e+00 : f32
    %43 = vector.broadcast %cst_14 : f32 to vector<4x512xf32>
    %44 = arith.maximumf %42, %43 : vector<4x512xf32>
    %45 = arith.addf %44, %1 : vector<4x512xf32>
    %c17_i32_15 = arith.constant 17 : i32
    %46 = tpu.dynamic_rotate %45 by %c17_i32_15 dim 1 : vector<4x512xf32>, i32 -> vector<4x512xf32>
    %c0_16 = arith.constant 0 : index
    %c0_17 = arith.constant 0 : index
    %47 = vector.load %arg3[%c0_16, %c0_17] : memref<9x512xf32, #tpu.memory_space<vmem>>, vector<1x512xf32>
    %48 = vector.broadcast %47 : vector<1x512xf32> to vector<4x512xf32>
    %49 = arith.mulf %46, %48 : vector<4x512xf32>
    %c16_i32_18 = arith.constant 16 : i32
    %50 = tpu.dynamic_rotate %45 by %c16_i32_18 dim 1 : vector<4x512xf32>, i32 -> vector<4x512xf32>
    %c1_19 = arith.constant 1 : index
    %c0_20 = arith.constant 0 : index
    %51 = vector.load %arg3[%c1_19, %c0_20] : memref<9x512xf32, #tpu.memory_space<vmem>>, vector<1x512xf32>
    %52 = vector.broadcast %51 : vector<1x512xf32> to vector<4x512xf32>
    %53 = arith.mulf %50, %52 : vector<4x512xf32>
    %c15_i32_21 = arith.constant 15 : i32
    %54 = tpu.dynamic_rotate %45 by %c15_i32_21 dim 1 : vector<4x512xf32>, i32 -> vector<4x512xf32>
    %c2_22 = arith.constant 2 : index
    %c0_23 = arith.constant 0 : index
    %55 = vector.load %arg3[%c2_22, %c0_23] : memref<9x512xf32, #tpu.memory_space<vmem>>, vector<1x512xf32>
    %56 = vector.broadcast %55 : vector<1x512xf32> to vector<4x512xf32>
    %57 = arith.mulf %54, %56 : vector<4x512xf32>
    %c1_i32_24 = arith.constant 1 : i32
    %58 = tpu.dynamic_rotate %45 by %c1_i32_24 dim 1 : vector<4x512xf32>, i32 -> vector<4x512xf32>
    %c3_25 = arith.constant 3 : index
    %c0_26 = arith.constant 0 : index
    %59 = vector.load %arg3[%c3_25, %c0_26] : memref<9x512xf32, #tpu.memory_space<vmem>>, vector<1x512xf32>
    %60 = vector.broadcast %59 : vector<1x512xf32> to vector<4x512xf32>
    %61 = arith.mulf %58, %60 : vector<4x512xf32>
    %c511_i32_27 = arith.constant 511 : i32
    %62 = tpu.dynamic_rotate %45 by %c511_i32_27 dim 1 : vector<4x512xf32>, i32 -> vector<4x512xf32>
    %c5_28 = arith.constant 5 : index
    %c0_29 = arith.constant 0 : index
    %63 = vector.load %arg3[%c5_28, %c0_29] : memref<9x512xf32, #tpu.memory_space<vmem>>, vector<1x512xf32>
    %64 = vector.broadcast %63 : vector<1x512xf32> to vector<4x512xf32>
    %65 = arith.mulf %62, %64 : vector<4x512xf32>
    %c497_i32_30 = arith.constant 497 : i32
    %66 = tpu.dynamic_rotate %45 by %c497_i32_30 dim 1 : vector<4x512xf32>, i32 -> vector<4x512xf32>
    %c6_31 = arith.constant 6 : index
    %c0_32 = arith.constant 0 : index
    %67 = vector.load %arg3[%c6_31, %c0_32] : memref<9x512xf32, #tpu.memory_space<vmem>>, vector<1x512xf32>
    %68 = vector.broadcast %67 : vector<1x512xf32> to vector<4x512xf32>
    %69 = arith.mulf %66, %68 : vector<4x512xf32>
    %c496_i32_33 = arith.constant 496 : i32
    %70 = tpu.dynamic_rotate %45 by %c496_i32_33 dim 1 : vector<4x512xf32>, i32 -> vector<4x512xf32>
    %c7_34 = arith.constant 7 : index
    %c0_35 = arith.constant 0 : index
    %71 = vector.load %arg3[%c7_34, %c0_35] : memref<9x512xf32, #tpu.memory_space<vmem>>, vector<1x512xf32>
    %72 = vector.broadcast %71 : vector<1x512xf32> to vector<4x512xf32>
    %73 = arith.mulf %70, %72 : vector<4x512xf32>
    %c495_i32_36 = arith.constant 495 : i32
    %74 = tpu.dynamic_rotate %45 by %c495_i32_36 dim 1 : vector<4x512xf32>, i32 -> vector<4x512xf32>
    %c8_37 = arith.constant 8 : index
    %c0_38 = arith.constant 0 : index
    %75 = vector.load %arg3[%c8_37, %c0_38] : memref<9x512xf32, #tpu.memory_space<vmem>>, vector<1x512xf32>
    %76 = vector.broadcast %75 : vector<1x512xf32> to vector<4x512xf32>
    %77 = arith.mulf %74, %76 : vector<4x512xf32>
    %78 = tpu.concatenate %49, %53, %57, %61, %45, %65, %69, %73, %77, %6 in 0 : vector<4x512xf32>, vector<4x512xf32>, vector<4x512xf32>, vector<4x512xf32>, vector<4x512xf32>, vector<4x512xf32>, vector<4x512xf32>, vector<4x512xf32>, vector<4x512xf32>, vector<4x512xf32> -> vector<40x512xf32>
    %c1_39 = arith.constant 1 : index
    %c0_40 = arith.constant 0 : index
    %c0_41 = arith.constant 0 : index
    %79 = vector.load %arg2[%c1_39, %c0_40, %c0_41] : memref<5x4x40xf32, #tpu.memory_space<vmem>>, vector<1x4x40xf32>
    %80 = vector.shape_cast %79 : vector<1x4x40xf32> to vector<4x40xf32>
    %cst_42 = arith.constant dense<0.000000e+00> : vector<4x512xf32>
    %81 = tpu.matmul %80, %78, %cst_42 {dimension_numbers = #tpu.dot_dimension_numbers<[1], [0], [0], [1], [0, 0, 1, 1], [], []>} : vector<4x40xf32>, vector<40x512xf32>, vector<4x512xf32> -> vector<4x512xf32>
    %82 = arith.addf %81, %1 : vector<4x512xf32>
    %c17_i32_43 = arith.constant 17 : i32
    %83 = tpu.dynamic_rotate %82 by %c17_i32_43 dim 1 : vector<4x512xf32>, i32 -> vector<4x512xf32>
    %c0_44 = arith.constant 0 : index
    %c0_45 = arith.constant 0 : index
    %84 = vector.load %arg3[%c0_44, %c0_45] : memref<9x512xf32, #tpu.memory_space<vmem>>, vector<1x512xf32>
    %85 = vector.broadcast %84 : vector<1x512xf32> to vector<4x512xf32>
    %86 = arith.mulf %83, %85 : vector<4x512xf32>
    %c16_i32_46 = arith.constant 16 : i32
    %87 = tpu.dynamic_rotate %82 by %c16_i32_46 dim 1 : vector<4x512xf32>, i32 -> vector<4x512xf32>
    %c1_47 = arith.constant 1 : index
    %c0_48 = arith.constant 0 : index
    %88 = vector.load %arg3[%c1_47, %c0_48] : memref<9x512xf32, #tpu.memory_space<vmem>>, vector<1x512xf32>
    %89 = vector.broadcast %88 : vector<1x512xf32> to vector<4x512xf32>
    %90 = arith.mulf %87, %89 : vector<4x512xf32>
    %c15_i32_49 = arith.constant 15 : i32
    %91 = tpu.dynamic_rotate %82 by %c15_i32_49 dim 1 : vector<4x512xf32>, i32 -> vector<4x512xf32>
    %c2_50 = arith.constant 2 : index
    %c0_51 = arith.constant 0 : index
    %92 = vector.load %arg3[%c2_50, %c0_51] : memref<9x512xf32, #tpu.memory_space<vmem>>, vector<1x512xf32>
    %93 = vector.broadcast %92 : vector<1x512xf32> to vector<4x512xf32>
    %94 = arith.mulf %91, %93 : vector<4x512xf32>
    %c1_i32_52 = arith.constant 1 : i32
    %95 = tpu.dynamic_rotate %82 by %c1_i32_52 dim 1 : vector<4x512xf32>, i32 -> vector<4x512xf32>
    %c3_53 = arith.constant 3 : index
    %c0_54 = arith.constant 0 : index
    %96 = vector.load %arg3[%c3_53, %c0_54] : memref<9x512xf32, #tpu.memory_space<vmem>>, vector<1x512xf32>
    %97 = vector.broadcast %96 : vector<1x512xf32> to vector<4x512xf32>
    %98 = arith.mulf %95, %97 : vector<4x512xf32>
    %c511_i32_55 = arith.constant 511 : i32
    %99 = tpu.dynamic_rotate %82 by %c511_i32_55 dim 1 : vector<4x512xf32>, i32 -> vector<4x512xf32>
    %c5_56 = arith.constant 5 : index
    %c0_57 = arith.constant 0 : index
    %100 = vector.load %arg3[%c5_56, %c0_57] : memref<9x512xf32, #tpu.memory_space<vmem>>, vector<1x512xf32>
    %101 = vector.broadcast %100 : vector<1x512xf32> to vector<4x512xf32>
    %102 = arith.mulf %99, %101 : vector<4x512xf32>
    %c497_i32_58 = arith.constant 497 : i32
    %103 = tpu.dynamic_rotate %82 by %c497_i32_58 dim 1 : vector<4x512xf32>, i32 -> vector<4x512xf32>
    %c6_59 = arith.constant 6 : index
    %c0_60 = arith.constant 0 : index
    %104 = vector.load %arg3[%c6_59, %c0_60] : memref<9x512xf32, #tpu.memory_space<vmem>>, vector<1x512xf32>
    %105 = vector.broadcast %104 : vector<1x512xf32> to vector<4x512xf32>
    %106 = arith.mulf %103, %105 : vector<4x512xf32>
    %c496_i32_61 = arith.constant 496 : i32
    %107 = tpu.dynamic_rotate %82 by %c496_i32_61 dim 1 : vector<4x512xf32>, i32 -> vector<4x512xf32>
    %c7_62 = arith.constant 7 : index
    %c0_63 = arith.constant 0 : index
    %108 = vector.load %arg3[%c7_62, %c0_63] : memref<9x512xf32, #tpu.memory_space<vmem>>, vector<1x512xf32>
    %109 = vector.broadcast %108 : vector<1x512xf32> to vector<4x512xf32>
    %110 = arith.mulf %107, %109 : vector<4x512xf32>
    %c495_i32_64 = arith.constant 495 : i32
    %111 = tpu.dynamic_rotate %82 by %c495_i32_64 dim 1 : vector<4x512xf32>, i32 -> vector<4x512xf32>
    %c8_65 = arith.constant 8 : index
    %c0_66 = arith.constant 0 : index
    %112 = vector.load %arg3[%c8_65, %c0_66] : memref<9x512xf32, #tpu.memory_space<vmem>>, vector<1x512xf32>
    %113 = vector.broadcast %112 : vector<1x512xf32> to vector<4x512xf32>
    %114 = arith.mulf %111, %113 : vector<4x512xf32>
    %115 = tpu.concatenate %86, %90, %94, %98, %82, %102, %106, %110, %114, %6 in 0 : vector<4x512xf32>, vector<4x512xf32>, vector<4x512xf32>, vector<4x512xf32>, vector<4x512xf32>, vector<4x512xf32>, vector<4x512xf32>, vector<4x512xf32>, vector<4x512xf32>, vector<4x512xf32> -> vector<40x512xf32>
    %c2_67 = arith.constant 2 : index
    %c0_68 = arith.constant 0 : index
    %c0_69 = arith.constant 0 : index
    %116 = vector.load %arg2[%c2_67, %c0_68, %c0_69] : memref<5x4x40xf32, #tpu.memory_space<vmem>>, vector<1x4x40xf32>
    %117 = vector.shape_cast %116 : vector<1x4x40xf32> to vector<4x40xf32>
    %cst_70 = arith.constant dense<0.000000e+00> : vector<4x512xf32>
    %118 = tpu.matmul %117, %115, %cst_70 {dimension_numbers = #tpu.dot_dimension_numbers<[1], [0], [0], [1], [0, 0, 1, 1], [], []>} : vector<4x40xf32>, vector<40x512xf32>, vector<4x512xf32> -> vector<4x512xf32>
    %cst_71 = arith.constant 0.000000e+00 : f32
    %119 = vector.broadcast %cst_71 : f32 to vector<4x512xf32>
    %120 = arith.maximumf %118, %119 : vector<4x512xf32>
    %121 = arith.addf %120, %82 : vector<4x512xf32>
    %c17_i32_72 = arith.constant 17 : i32
    %122 = tpu.dynamic_rotate %121 by %c17_i32_72 dim 1 : vector<4x512xf32>, i32 -> vector<4x512xf32>
    %c0_73 = arith.constant 0 : index
    %c0_74 = arith.constant 0 : index
    %123 = vector.load %arg3[%c0_73, %c0_74] : memref<9x512xf32, #tpu.memory_space<vmem>>, vector<1x512xf32>
    %124 = vector.broadcast %123 : vector<1x512xf32> to vector<4x512xf32>
    %125 = arith.mulf %122, %124 : vector<4x512xf32>
    %c16_i32_75 = arith.constant 16 : i32
    %126 = tpu.dynamic_rotate %121 by %c16_i32_75 dim 1 : vector<4x512xf32>, i32 -> vector<4x512xf32>
    %c1_76 = arith.constant 1 : index
    %c0_77 = arith.constant 0 : index
    %127 = vector.load %arg3[%c1_76, %c0_77] : memref<9x512xf32, #tpu.memory_space<vmem>>, vector<1x512xf32>
    %128 = vector.broadcast %127 : vector<1x512xf32> to vector<4x512xf32>
    %129 = arith.mulf %126, %128 : vector<4x512xf32>
    %c15_i32_78 = arith.constant 15 : i32
    %130 = tpu.dynamic_rotate %121 by %c15_i32_78 dim 1 : vector<4x512xf32>, i32 -> vector<4x512xf32>
    %c2_79 = arith.constant 2 : index
    %c0_80 = arith.constant 0 : index
    %131 = vector.load %arg3[%c2_79, %c0_80] : memref<9x512xf32, #tpu.memory_space<vmem>>, vector<1x512xf32>
    %132 = vector.broadcast %131 : vector<1x512xf32> to vector<4x512xf32>
    %133 = arith.mulf %130, %132 : vector<4x512xf32>
    %c1_i32_81 = arith.constant 1 : i32
    %134 = tpu.dynamic_rotate %121 by %c1_i32_81 dim 1 : vector<4x512xf32>, i32 -> vector<4x512xf32>
    %c3_82 = arith.constant 3 : index
    %c0_83 = arith.constant 0 : index
    %135 = vector.load %arg3[%c3_82, %c0_83] : memref<9x512xf32, #tpu.memory_space<vmem>>, vector<1x512xf32>
    %136 = vector.broadcast %135 : vector<1x512xf32> to vector<4x512xf32>
    %137 = arith.mulf %134, %136 : vector<4x512xf32>
    %c511_i32_84 = arith.constant 511 : i32
    %138 = tpu.dynamic_rotate %121 by %c511_i32_84 dim 1 : vector<4x512xf32>, i32 -> vector<4x512xf32>
    %c5_85 = arith.constant 5 : index
    %c0_86 = arith.constant 0 : index
    %139 = vector.load %arg3[%c5_85, %c0_86] : memref<9x512xf32, #tpu.memory_space<vmem>>, vector<1x512xf32>
    %140 = vector.broadcast %139 : vector<1x512xf32> to vector<4x512xf32>
    %141 = arith.mulf %138, %140 : vector<4x512xf32>
    %c497_i32_87 = arith.constant 497 : i32
    %142 = tpu.dynamic_rotate %121 by %c497_i32_87 dim 1 : vector<4x512xf32>, i32 -> vector<4x512xf32>
    %c6_88 = arith.constant 6 : index
    %c0_89 = arith.constant 0 : index
    %143 = vector.load %arg3[%c6_88, %c0_89] : memref<9x512xf32, #tpu.memory_space<vmem>>, vector<1x512xf32>
    %144 = vector.broadcast %143 : vector<1x512xf32> to vector<4x512xf32>
    %145 = arith.mulf %142, %144 : vector<4x512xf32>
    %c496_i32_90 = arith.constant 496 : i32
    %146 = tpu.dynamic_rotate %121 by %c496_i32_90 dim 1 : vector<4x512xf32>, i32 -> vector<4x512xf32>
    %c7_91 = arith.constant 7 : index
    %c0_92 = arith.constant 0 : index
    %147 = vector.load %arg3[%c7_91, %c0_92] : memref<9x512xf32, #tpu.memory_space<vmem>>, vector<1x512xf32>
    %148 = vector.broadcast %147 : vector<1x512xf32> to vector<4x512xf32>
    %149 = arith.mulf %146, %148 : vector<4x512xf32>
    %c495_i32_93 = arith.constant 495 : i32
    %150 = tpu.dynamic_rotate %121 by %c495_i32_93 dim 1 : vector<4x512xf32>, i32 -> vector<4x512xf32>
    %c8_94 = arith.constant 8 : index
    %c0_95 = arith.constant 0 : index
    %151 = vector.load %arg3[%c8_94, %c0_95] : memref<9x512xf32, #tpu.memory_space<vmem>>, vector<1x512xf32>
    %152 = vector.broadcast %151 : vector<1x512xf32> to vector<4x512xf32>
    %153 = arith.mulf %150, %152 : vector<4x512xf32>
    %154 = tpu.concatenate %125, %129, %133, %137, %121, %141, %145, %149, %153, %6 in 0 : vector<4x512xf32>, vector<4x512xf32>, vector<4x512xf32>, vector<4x512xf32>, vector<4x512xf32>, vector<4x512xf32>, vector<4x512xf32>, vector<4x512xf32>, vector<4x512xf32>, vector<4x512xf32> -> vector<40x512xf32>
    %c3_96 = arith.constant 3 : index
    %c0_97 = arith.constant 0 : index
    %c0_98 = arith.constant 0 : index
    %155 = vector.load %arg2[%c3_96, %c0_97, %c0_98] : memref<5x4x40xf32, #tpu.memory_space<vmem>>, vector<1x4x40xf32>
    %156 = vector.shape_cast %155 : vector<1x4x40xf32> to vector<4x40xf32>
    %cst_99 = arith.constant dense<0.000000e+00> : vector<4x512xf32>
    %157 = tpu.matmul %156, %154, %cst_99 {dimension_numbers = #tpu.dot_dimension_numbers<[1], [0], [0], [1], [0, 0, 1, 1], [], []>} : vector<4x40xf32>, vector<40x512xf32>, vector<4x512xf32> -> vector<4x512xf32>
    %158 = arith.addf %157, %82 : vector<4x512xf32>
    %c17_i32_100 = arith.constant 17 : i32
    %159 = tpu.dynamic_rotate %158 by %c17_i32_100 dim 1 : vector<4x512xf32>, i32 -> vector<4x512xf32>
    %c0_101 = arith.constant 0 : index
    %c0_102 = arith.constant 0 : index
    %160 = vector.load %arg3[%c0_101, %c0_102] : memref<9x512xf32, #tpu.memory_space<vmem>>, vector<1x512xf32>
    %161 = vector.broadcast %160 : vector<1x512xf32> to vector<4x512xf32>
    %162 = arith.mulf %159, %161 : vector<4x512xf32>
    %c16_i32_103 = arith.constant 16 : i32
    %163 = tpu.dynamic_rotate %158 by %c16_i32_103 dim 1 : vector<4x512xf32>, i32 -> vector<4x512xf32>
    %c1_104 = arith.constant 1 : index
    %c0_105 = arith.constant 0 : index
    %164 = vector.load %arg3[%c1_104, %c0_105] : memref<9x512xf32, #tpu.memory_space<vmem>>, vector<1x512xf32>
    %165 = vector.broadcast %164 : vector<1x512xf32> to vector<4x512xf32>
    %166 = arith.mulf %163, %165 : vector<4x512xf32>
    %c15_i32_106 = arith.constant 15 : i32
    %167 = tpu.dynamic_rotate %158 by %c15_i32_106 dim 1 : vector<4x512xf32>, i32 -> vector<4x512xf32>
    %c2_107 = arith.constant 2 : index
    %c0_108 = arith.constant 0 : index
    %168 = vector.load %arg3[%c2_107, %c0_108] : memref<9x512xf32, #tpu.memory_space<vmem>>, vector<1x512xf32>
    %169 = vector.broadcast %168 : vector<1x512xf32> to vector<4x512xf32>
    %170 = arith.mulf %167, %169 : vector<4x512xf32>
    %c1_i32_109 = arith.constant 1 : i32
    %171 = tpu.dynamic_rotate %158 by %c1_i32_109 dim 1 : vector<4x512xf32>, i32 -> vector<4x512xf32>
    %c3_110 = arith.constant 3 : index
    %c0_111 = arith.constant 0 : index
    %172 = vector.load %arg3[%c3_110, %c0_111] : memref<9x512xf32, #tpu.memory_space<vmem>>, vector<1x512xf32>
    %173 = vector.broadcast %172 : vector<1x512xf32> to vector<4x512xf32>
    %174 = arith.mulf %171, %173 : vector<4x512xf32>
    %c511_i32_112 = arith.constant 511 : i32
    %175 = tpu.dynamic_rotate %158 by %c511_i32_112 dim 1 : vector<4x512xf32>, i32 -> vector<4x512xf32>
    %c5_113 = arith.constant 5 : index
    %c0_114 = arith.constant 0 : index
    %176 = vector.load %arg3[%c5_113, %c0_114] : memref<9x512xf32, #tpu.memory_space<vmem>>, vector<1x512xf32>
    %177 = vector.broadcast %176 : vector<1x512xf32> to vector<4x512xf32>
    %178 = arith.mulf %175, %177 : vector<4x512xf32>
    %c497_i32_115 = arith.constant 497 : i32
    %179 = tpu.dynamic_rotate %158 by %c497_i32_115 dim 1 : vector<4x512xf32>, i32 -> vector<4x512xf32>
    %c6_116 = arith.constant 6 : index
    %c0_117 = arith.constant 0 : index
    %180 = vector.load %arg3[%c6_116, %c0_117] : memref<9x512xf32, #tpu.memory_space<vmem>>, vector<1x512xf32>
    %181 = vector.broadcast %180 : vector<1x512xf32> to vector<4x512xf32>
    %182 = arith.mulf %179, %181 : vector<4x512xf32>
    %c496_i32_118 = arith.constant 496 : i32
    %183 = tpu.dynamic_rotate %158 by %c496_i32_118 dim 1 : vector<4x512xf32>, i32 -> vector<4x512xf32>
    %c7_119 = arith.constant 7 : index
    %c0_120 = arith.constant 0 : index
    %184 = vector.load %arg3[%c7_119, %c0_120] : memref<9x512xf32, #tpu.memory_space<vmem>>, vector<1x512xf32>
    %185 = vector.broadcast %184 : vector<1x512xf32> to vector<4x512xf32>
    %186 = arith.mulf %183, %185 : vector<4x512xf32>
    %c495_i32_121 = arith.constant 495 : i32
    %187 = tpu.dynamic_rotate %158 by %c495_i32_121 dim 1 : vector<4x512xf32>, i32 -> vector<4x512xf32>
    %c8_122 = arith.constant 8 : index
    %c0_123 = arith.constant 0 : index
    %188 = vector.load %arg3[%c8_122, %c0_123] : memref<9x512xf32, #tpu.memory_space<vmem>>, vector<1x512xf32>
    %189 = vector.broadcast %188 : vector<1x512xf32> to vector<4x512xf32>
    %190 = arith.mulf %187, %189 : vector<4x512xf32>
    %191 = tpu.concatenate %162, %166, %170, %174, %158, %178, %182, %186, %190, %6 in 0 : vector<4x512xf32>, vector<4x512xf32>, vector<4x512xf32>, vector<4x512xf32>, vector<4x512xf32>, vector<4x512xf32>, vector<4x512xf32>, vector<4x512xf32>, vector<4x512xf32>, vector<4x512xf32> -> vector<40x512xf32>
    %c4 = arith.constant 4 : index
    %c0_124 = arith.constant 0 : index
    %c0_125 = arith.constant 0 : index
    %192 = vector.load %arg2[%c4, %c0_124, %c0_125] : memref<5x4x40xf32, #tpu.memory_space<vmem>>, vector<1x4x40xf32>
    %193 = vector.shape_cast %192 : vector<1x4x40xf32> to vector<4x40xf32>
    %cst_126 = arith.constant dense<0.000000e+00> : vector<4x512xf32>
    %194 = tpu.matmul %193, %191, %cst_126 {dimension_numbers = #tpu.dot_dimension_numbers<[1], [0], [0], [1], [0, 0, 1, 1], [], []>} : vector<4x40xf32>, vector<40x512xf32>, vector<4x512xf32> -> vector<4x512xf32>
    %195 = arith.addf %194, %1 : vector<4x512xf32>
    %c0_127 = arith.constant 0 : index
    %c0_128 = arith.constant 0 : index
    %c0_129 = arith.constant 0 : index
    %196 = vector.load %arg4[%c0_127, %c0_128, %c0_129] : memref<1x4x512xf32, #tpu.memory_space<vmem>>, vector<1x4x512xf32>
    %197 = vector.shape_cast %196 : vector<1x4x512xf32> to vector<4x512xf32>
    %198 = vector.shape_cast %195 : vector<4x512xf32> to vector<1x4x512xf32>
    tpu.vector_store %arg4[%c0_127, %c0_128, %c0_129], %198 {strides = array<i32>} : memref<1x4x512xf32, #tpu.memory_space<vmem>>, vector<1x4x512xf32>,
    return
  }
  func.func @transform_0(%arg0: i32) -> (i32, i32, i32) {
    %c0_i32 = arith.constant 0 : i32
    %c0_i32_0 = arith.constant 0 : i32
    %c0_i32_1 = arith.constant 0 : i32
    return %arg0, %c0_i32, %c0_i32_0 : i32, i32, i32
  }
  func.func @transform_1(%arg0: i32) -> (i32, i32, i32) {
    %c0_i32 = arith.constant 0 : i32
    %c0_i32_0 = arith.constant 0 : i32
    %c0_i32_1 = arith.constant 0 : i32
    %c0_i32_2 = arith.constant 0 : i32
    return %c0_i32, %c0_i32_0, %c0_i32_1 : i32, i32, i32
  }
  func.func @transform_2(%arg0: i32) -> (i32, i32) {
    %c0_i32 = arith.constant 0 : i32
    %c0_i32_0 = arith.constant 0 : i32
    %c0_i32_1 = arith.constant 0 : i32
    return %c0_i32, %c0_i32_0 : i32, i32
  }
  func.func @transform_3(%arg0: i32) -> (i32, i32, i32) {
    %c0_i32 = arith.constant 0 : i32
    %c0_i32_0 = arith.constant 0 : i32
    %c0_i32_1 = arith.constant 0 : i32
    return %arg0, %c0_i32, %c0_i32_0 : i32, i32, i32
  }
}

</mosaic_0001>

<bundles_post_ra>
// kernel: tpu_custom_call.1
= control target key start
LH: loop header
LB: loop body
LE: loop exit
PB: predicated region body
PF: predicated region fallthrough
CT: control target
= control target key end

     0   :  { %8 = vsyncpa [#allocation3], 0  ;;  %s3331_s0 = inlined_call_operand.hbm [shape: f32[1,4,512], index: 0, kind: input, shape index: {}]   ;;  %s3332_s1 = inlined_call_operand.hbm [shape: f32[5,4,40], index: 1, kind: input, shape index: {}]   ;;  %s3333_s2 = inlined_call_operand.hbm [shape: f32[9,512], index: 2, kind: input, shape index: {}]   ;;  %s3334_s3 = inlined_call_operand.hbm [shape: f32[1,4,512], index: 3, kind: output, shape index: {}]  }
   0x1   :  { %9 = vsyncpa [#allocation6], 0 }
   0x2   :  { %10 = vsyncpa [#allocation4], 0  ;;  %s2139_s12 = smov [#allocation5]  }
   0x3   :  { %s26_s13 = sshll.u32 %s2139_s12, 4  ;;  %s27_s13 = int_to_ptr.vmem [resolvable:$true] %s26_s13 }
   0x4   :  { %s2061_s14 = scalar_lea.vmem %s27_s13, 320  ;;  %p2066_p1 = scmp.lt.s32.totalorder %s27_s13, %s27_s13 }
   0x5   :  { %p2062_p0 = scmp.ne.s32.totalorder %s27_s13, %s2061_s14  ;;  %p2067_p2 = scmp.lt.s32.totalorder %s2061_s14, %s2061_s14 }
   0x7   :  { %p2068_p3 = por %p2067_p2, %p2066_p1 }
   0x9   :  { %p2069_p4 = pnand %p2068_p3, %p2062_p0 }
   0xb   :  { %2072 = shalt.err (!%p2069_p4)
}
   0xc   :  { %s2140_s15 = smov 64   ;;  %s2141_s16 = smov 4  }
   0xd   :  { %32 = dma.hbm_to_vmem [thread:$0]  %s3332_s1, 320, %s27_s13, [#allocation6], %s2140_s15, %s2140_s15, %s2141_s16  }
   0xe   :  { %s2142_s19 = smov [#allocation2]   ;;  %s2143_s21 = smov [#allocation7]  }
   0xf   :  { %s17_s20 = sshll.u32 %s2142_s19, 4  ;;  %s38_s22 = sshll.u32 %s2143_s21, 4  ;;  %s18_s20 = int_to_ptr.vmem [resolvable:$true] %s17_s20  ;;  %s39_s22 = int_to_ptr.vmem [resolvable:$true] %s38_s22 }
  0x10   :  { %s2081_s23 = scalar_lea.vmem %s18_s20, 256  ;;  %p2086_p6 = scmp.lt.s32.totalorder %s18_s20, %s18_s20 }
  0x11   :  { %p2082_p5 = scmp.ne.s32.totalorder %s18_s20, %s2081_s23  ;;  %p2087_p7 = scmp.lt.s32.totalorder %s2081_s23, %s2081_s23 }
  0x13   :  { %p2088_p8 = por %p2087_p7, %p2086_p6 }
  0x15   :  { %p2089_p9 = pnand %p2088_p8, %p2082_p5 }
  0x17   :  { %2092 = shalt.err (!%p2089_p9)
}
  0x18   :  { %20 = dma.hbm_to_vmem [thread:$0]  %s3331_s0, 256, %s18_s20, [#allocation3]  }
  0x19   :  { %s2101_s26 = scalar_lea.vmem %s39_s22, 1024  ;;  %p2106_p11 = scmp.lt.s32.totalorder %s39_s22, %s39_s22 }
  0x1a   :  { %p2102_p10 = scmp.ne.s32.totalorder %s39_s22, %s2101_s26  ;;  %p2107_p12 = scmp.lt.s32.totalorder %s2101_s26, %s2101_s26 }
  0x1c   :  { %p2108_p13 = por %p2107_p12, %p2106_p11 }
  0x1e   :  { %p2109_p0 = pnand %p2108_p13, %p2102_p10 }
  0x20   :  { %2112 = shalt.err (!%p2109_p0)
}
  0x21   :  { %s2144_s1 = smov 512   ;;  %s2145_s27 = smov 32  }
  0x22   :  { %44 = dma.hbm_to_vmem [thread:$0]  %s3333_s2, 1024, %s39_s22, [#allocation6], %s2144_s1, %s2144_s1, %s2145_s27  }
  0x23   :  { %2133 = dma.done.wait [#allocation3], 256  }
  0x24   :  { %2134 = vsyncadd [#allocation3], 4294967040 }
  0x25   :  { %2135 = dma.done.wait [#allocation6], 1344  }
  0x26   :  { %2136 = vsyncadd [#allocation6], 4294965952  ;;  %v3335_v0 = vmov 0.0   ;;  %v2187_v1 = vld [vmem:[#allocation2 + $0x8] sm:$0xff]  ;;  %v2189_v2 = vld [vmem:[#allocation2] sm:$0xff]  ;;  %s2147_s0 = smov 112   ;;  %v56_v5 = vlaneseq }
  0x27   :  { %529 = vmatprep.mubr.f32.mxu0 %v3335_v0  ;;  %600 = vmatprep.mubr.f32.mxu1 %v3335_v0  ;;  %v2197_v3 = vcombine.high %v2187_v1, %v2187_v1  ;;  %s2148_s2 = smov 111   ;;  %v2205_v4 = vcombine.high %v2189_v2, %v2189_v2  ;;  %s2149_s30 = smov 127   ;;  %v362_v13 = vld [vmem:[#allocation7 + $0x20] ss:$8 sm:$0xf]  ;;  %vm439_vm2 = vcmask 1043456  }
  0x28   :  { %312 = vrot.lane.b32.xlu1 %v2187_v1, %s2147_s0  ;;  %308 = vrot.lane.b32.xlu0 %v2189_v2, %s2147_s0  ;;  %s2150_s4 = smov 113   ;;  %s2151_s5 = smov 1   ;;  %v57_v8 = vshrl.u32 %v56_v5, 7  ;;  %v2265_v11 = vand.u32 127, %v56_v5  ;;  %vm461_vm10 = vcmask 326656  }
  0x29   :  { %3349 = vst [vmem:[#allocation12_spill] sm:$0xff] %v2197_v3  ;;  %3350 = vst [vmem:[#allocation13_spill] sm:$0xff] %v2205_v4  ;;  %s2152_s6 = smov 16   ;;  %s2153_s7 = smov 15  }
  0x2a   :  { %s2154_s8 = smov 17   ;;  %v2267_v12 = vsub.s32 0, %v57_v8  ;;  %vm58_vm0 = vcmp.eq.s32.totalorder %v57_v8, 0  ;;  %vm356_vm1 = vcmp.lt.s32.totalorder %v2265_v11, 111  ;;  %v2270_v14 = vsub.s32 2, %v57_v8  ;;  %s2155_s9 = smov [#allocation8]  }
  0x2b   :  { %v2272_v15 = vsub.s32 3, %v57_v8  ;;  %v2274_v17 = vsub.s32 1, %v57_v8  ;;  %v2021_v19 = vsel %vm58_vm0, 1.0, %v3335_v0  ;;  %v322_v35 = vld [vmem:[#allocation7 + $0x7] ss:$8 sm:$0xf] }
  0x2c   :  { %314 = vrot.lane.b32.xlu1 %v2197_v3, %s2147_s0  ;;  %348 = vrot.lane.b32.xlu0 %v2189_v2, %s2148_s2  ;;  %v2278_v20 = vrot.slane %v362_v13, %v2267_v12  ;;  %v2283_v22 = vrot.slane %v362_v13, %v2270_v14  ;;  %v2291_v25 = vrot.slane %v2021_v19, 4  ;;  %vm316_vm3 = vcmp.lt.s32.totalorder %v2265_v11, 112  ;;  %v242_v44 = vld [vmem:[#allocation7 + $0x5] ss:$8 sm:$0xf]  ;;  %s2011_s10 = sshll.u32 %s2155_s9, 4  ;;  %s2012_s10 = int_to_ptr.vmem [resolvable:$true] %s2011_s10 }
  0x2d   :  { %v2286_v23 = vrot.slane %v362_v13, %v2274_v17  ;;  %v2289_v24 = vrot.slane %v362_v13, %v2272_v15  ;;  %vm236_vm4 = vcmp.lt.s32.totalorder %v2265_v11, 127  ;;  %v2314_v42 = vrot.slane %v322_v35, %v2270_v14  ;;  %v282_v57 = vld [vmem:[#allocation7 + $0x6] ss:$8 sm:$0xf]  ;;  %s2113_s11 = scalar_lea.vmem %s2012_s10, 256  ;;  %p2118_p2 = scmp.lt.s32.totalorder %s2012_s10, %s2012_s10 }
  0x2e   :  { %v2317_v43 = vrot.slane %v322_v35, %v2272_v15  ;;  %v2325_v47 = vrot.slane %v322_v35, %v2274_v17  ;;  %v2328_v48 = vrot.slane %v242_v44, %v2272_v15  ;;  %vm276_vm5 = vcmp.lt.s32.totalorder %v2265_v11, 113  ;;  %p2114_p1 = scmp.ne.s32.totalorder %s2012_s10, %s2113_s11  ;;  %p2119_p3 = scmp.lt.s32.totalorder %s2113_s11, %s2113_s11 }
  0x2f   :  { %v2336_v53 = vrot.slane %v322_v35, %v2267_v12  ;;  %v2339_v54 = vrot.slane %v242_v44, %v2267_v12  ;;  %v2342_v55 = vrot.slane %v242_v44, %v2274_v17  ;;  %v2345_v56 = vrot.slane %v242_v44, %v2270_v14 }
  0x30   :  { %350 = vrot.lane.b32.xlu1 %v2205_v4, %s2148_s2  ;;  %310 = vrot.lane.b32.xlu0 %v2205_v4, %s2147_s0  ;;  %3351 = vst [vmem:[#allocation14_spill] sm:$0xff] %v2317_v43  ;;  %v2373_v19 = vrot.slane %v282_v57, %v2270_v14  ;;  %vm196_vm6 = vcmp.lt.s32.totalorder %v2265_v11, 1  ;;  %vm116_vm7 = vcmp.lt.s32.totalorder %v2265_v11, 16  ;;  %vm156_vm8 = vcmp.lt.s32.totalorder %v2265_v11, 15  ;;  %p2120_p4 = por %p2119_p3, %p2118_p2 }
  0x31   :  { %3352 = vst [vmem:[#allocation15_spill] sm:$0xff] %v2339_v54  ;;  %3353 = vst [vmem:[#allocation16_spill] sm:$0xff] %v2342_v55  ;;  %vm77_vm9 = vcmp.lt.s32.totalorder %v2265_v11, 17 }
  0x32   :  { %p2121_p5 = pnand %p2120_p4, %p2114_p1 }
  0x34   :  { %354 = vrot.lane.b32.xlu1 %v2197_v3, %s2148_s2  ;;  %352 = vrot.lane.b32.xlu0 %v2187_v1, %s2148_s2 }
  0x38   :  { %230 = vrot.lane.b32.xlu1 %v2205_v4, %s2149_s30  ;;  %228 = vrot.lane.b32.xlu0 %v2189_v2, %s2149_s30 }
  0x3c   :  { %234 = vrot.lane.b32.xlu1 %v2197_v3, %s2149_s30  ;;  %232 = vrot.lane.b32.xlu0 %v2187_v1, %s2149_s30 }
  0x40   :  { %270 = vrot.lane.b32.xlu1 %v2205_v4, %s2150_s4  ;;  %268 = vrot.lane.b32.xlu0 %v2189_v2, %s2150_s4 }
  0x44   :  { %274 = vrot.lane.b32.xlu1 %v2197_v3, %s2150_s4  ;;  %272 = vrot.lane.b32.xlu0 %v2187_v1, %s2150_s4 }
  0x48   :  { %190 = vrot.lane.b32.xlu1 %v2205_v4, %s2151_s5  ;;  %188 = vrot.lane.b32.xlu0 %v2189_v2, %s2151_s5 }
  0x4c   :  { %194 = vrot.lane.b32.xlu1 %v2197_v3, %s2151_s5  ;;  %192 = vrot.lane.b32.xlu0 %v2187_v1, %s2151_s5 }
  0x50   :  { %110 = vrot.lane.b32.xlu1 %v2205_v4, %s2152_s6  ;;  %108 = vrot.lane.b32.xlu0 %v2189_v2, %s2152_s6 }
  0x54   :  { %114 = vrot.lane.b32.xlu1 %v2197_v3, %s2152_s6  ;;  %112 = vrot.lane.b32.xlu0 %v2187_v1, %s2152_s6 }
  0x58   :  { %150 = vrot.lane.b32.xlu1 %v2205_v4, %s2153_s7  ;;  %148 = vrot.lane.b32.xlu0 %v2189_v2, %s2153_s7 }
  0x5c   :  { %154 = vrot.lane.b32.xlu1 %v2197_v3, %s2153_s7  ;;  %152 = vrot.lane.b32.xlu0 %v2187_v1, %s2153_s7 }
  0x60   :  { %69 = vrot.lane.b32.xlu1 %v2205_v4, %s2154_s8  ;;  %67 = vrot.lane.b32.xlu0 %v2189_v2, %s2154_s8 }
  0x64   :  { %73 = vrot.lane.b32.xlu1 %v2197_v3, %s2154_s8  ;;  %71 = vrot.lane.b32.xlu0 %v2187_v1, %s2154_s8 }
  0x9a   :  { %v313_v6 = vpop.permute.xlu1 %312  ;;  %v2263_v7 = vpop.permute.xlu0 %308 }
  0x9e   :  { %v315_v9 = vpop.permute.xlu1 %314  ;;  %v349_v10 = vpop.permute.xlu0 %348 }
  0x9f   :  { %v317_v45 = vsel %vm316_vm3, %v313_v6, %v315_v9  ;;  %v320_v46 = vsel %vm316_vm3, %v315_v9, %v2263_v7 }
  0xa0   :  { %v346_v58 = vmul.f32 %v2314_v42, %v317_v45  ;;  %v347_v59 = vmul.f32 %v2317_v43, %v320_v46 }
  0xa2   :  { %v351_v16 = vpop.permute.xlu1 %350  ;;  %v311_v18 = vpop.permute.xlu0 %310 }
  0xa3   :  { %v359_v21 = vsel %vm356_vm1, %v349_v10, %v351_v16  ;;  %v318_v51 = vsel %vm316_vm3, %v311_v18, %v313_v6  ;;  %v319_v60 = vsel %vm316_vm3, %v2263_v7, %v311_v18  ;;  %v2364_v7 = vrot.slane %v282_v57, %v2272_v15 }
  0xa4   :  { %v384_v28 = vmul.f32 %v2278_v20, %v359_v21  ;;  %v345_v62 = vmul.f32 %v2325_v47, %v318_v51  ;;  %v2370_v18 = vrot.slane %v282_v57, %v2274_v17  ;;  %v344_v21 = vmul.f32 %v2336_v53, %v319_v60 }
  0xa6   :  { %v355_v26 = vpop.permute.xlu1 %354  ;;  %v353_v27 = vpop.permute.xlu0 %352  ;;  %v456_v41 = vsel %vm439_vm2, %v384_v28, %v2291_v25  ;;  %v430_v28 = vrot.slane %v346_v58, 4  ;;  %v428_v44 = vrot.slane %v344_v21, 4 }
  0xa7   :  { %v360_v29 = vsel %vm356_vm1, %v355_v26, %v349_v10  ;;  %v357_v30 = vsel %vm356_vm1, %v353_v27, %v355_v26  ;;  %v358_v31 = vsel %vm356_vm1, %v351_v16, %v353_v27  ;;  %v2361_v10 = vrot.slane %v282_v57, %v2267_v12 }
  0xa8   :  { %v386_v32 = vmul.f32 %v2283_v22, %v357_v30  ;;  %v385_v33 = vmul.f32 %v2286_v23, %v358_v31  ;;  %v387_v34 = vmul.f32 %v2289_v24, %v360_v29  ;;  %v431_v29 = vrot.slane %v347_v59, 4 }
  0xa9   :  { %3354 = vst [vmem:[#allocation17_spill] sm:$0xff] %v2361_v10  ;;  %v429_v30 = vrot.slane %v345_v62, 4 }
  0xaa   :  { %v231_v36 = vpop.permute.xlu1 %230  ;;  %v229_v37 = vpop.permute.xlu0 %228  ;;  %v457_v38 = vsel %vm439_vm2, %v385_v33, %v2291_v25  ;;  %v459_v39 = vsel %vm439_vm2, %v387_v34, %v2291_v25  ;;  %v458_v40 = vsel %vm439_vm2, %v386_v32, %v2291_v25 }
  0xab   :  { %487 = vmatprep.subr.mxu0 %v457_v38  ;;  %558 = vmatprep.subr.mxu1 %v459_v39  ;;  %v239_v63 = vsel %vm236_vm4, %v229_v37, %v231_v36 }
  0xac   :  { %488 = vmatpush1.msra.mxu0 %v456_v41  ;;  %559 = vmatpush1.msra.mxu1 %v458_v40  ;;  %v264_v26 = vmul.f32 %v2339_v54, %v239_v63 }
  0xae   :  { %v235_v49 = vpop.permute.xlu1 %234  ;;  %v233_v50 = vpop.permute.xlu0 %232  ;;  %v416_v45 = vrot.slane %v264_v26, 4  ;;  %v162_v26 = vld [vmem:[#allocation7 + $0x2] ss:$8 sm:$0xf] }
  0xaf   :  { %v240_v52 = vsel %vm236_vm4, %v235_v49, %v229_v37  ;;  %v238_v61 = vsel %vm236_vm4, %v231_v36, %v233_v50  ;;  %v237_v6 = vsel %vm236_vm4, %v233_v50, %v235_v49 }
  0xb0   :  { %v267_v5 = vmul.f32 %v2328_v48, %v240_v52  ;;  %v265_v13 = vmul.f32 %v2342_v55, %v238_v61  ;;  %v266_v27 = vmul.f32 %v2345_v56, %v237_v6  ;;  %v448_v61 = vsel %vm439_vm2, %v2189_v2, %v416_v45  ;;  %v202_v6 = vld [vmem:[#allocation7 + $0x3] ss:$8 sm:$0xf]  ;;  %v82_v45 = vld [vmem:[#allocation7] ss:$8 sm:$0xf] }
  0xb1   :  { %v2407_v21 = vrot.slane %v202_v6, %v2267_v12 }
  0xb2   :  { %v271_v8 = vpop.permute.xlu1 %270  ;;  %v269_v9 = vpop.permute.xlu0 %268  ;;  %v419_v31 = vrot.slane %v267_v5, 4  ;;  %v417_v38 = vrot.slane %v265_v13, 4  ;;  %v418_v46 = vrot.slane %v266_v27, 4  ;;  %v2402_v13 = vrot.slane %v202_v6, %v2274_v17 }
  0xb3   :  { %v279_v16 = vsel %vm276_vm5, %v269_v9, %v271_v8 }
  0xb4   :  { %v304_v34 = vmul.f32 %v2361_v10, %v279_v16  ;;  %v449_v59 = vsel %vm439_vm2, %v2205_v4, %v417_v38  ;;  %v451_v60 = vsel %vm439_vm2, %v2197_v3, %v419_v31  ;;  %v450_v62 = vsel %vm439_vm2, %v2187_v1, %v418_v46 }
  0xb6   :  { %v275_v32 = vpop.permute.xlu1 %274  ;;  %v273_v33 = vpop.permute.xlu0 %272  ;;  %v452_v58 = vsel %vm439_vm2, %v304_v34, %v428_v44  ;;  %v122_v34 = vld [vmem:[#allocation7 + $0x1] ss:$8 sm:$0xf] }
  0xb7   :  { %v280_v35 = vsel %vm276_vm5, %v275_v32, %v269_v9  ;;  %v277_v36 = vsel %vm276_vm5, %v273_v33, %v275_v32  ;;  %v278_v37 = vsel %vm276_vm5, %v271_v8, %v273_v33 }
  0xb8   :  { %v307_v39 = vmul.f32 %v2364_v7, %v280_v35  ;;  %v305_v40 = vmul.f32 %v2370_v18, %v278_v37  ;;  %v306_v41 = vmul.f32 %v2373_v19, %v277_v36  ;;  %v2425_v36 = vrot.slane %v162_v26, %v2274_v17 }
  0xba   :  { %v191_v49 = vpop.permute.xlu1 %190  ;;  %v189_v50 = vpop.permute.xlu0 %188  ;;  %v453_v51 = vsel %vm439_vm2, %v305_v40, %v429_v30  ;;  %v455_v52 = vsel %vm439_vm2, %v307_v39, %v431_v29  ;;  %v454_v57 = vsel %vm439_vm2, %v306_v41, %v430_v28  ;;  %v2412_v28 = vrot.slane %v202_v6, %v2270_v14 }
  0xbb   :  { %489 = vmatprep.subr.mxu0 %v453_v51  ;;  %560 = vmatprep.subr.mxu1 %v455_v52  ;;  %v199_v16 = vsel %vm196_vm6, %v189_v50, %v191_v49  ;;  %v2415_v29 = vrot.slane %v202_v6, %v2272_v15  ;;  %v2432_v40 = vrot.slane %v122_v34, %v2274_v17 }
  0xbc   :  { %490 = vmatpush1.msra.mxu0 %v452_v58  ;;  %561 = vmatpush1.msra.mxu1 %v454_v57  ;;  %v225_v35 = vmul.f32 %v2402_v13, %v199_v16  ;;  %v2442_v51 = vrot.slane %v162_v26, %v2267_v12  ;;  %v2446_v58 = vrot.slane %v162_v26, %v2270_v14 }
  0xbd   :  { %491 = vmatprep.subr.mxu0 %v449_v59  ;;  %562 = vmatprep.subr.mxu1 %v451_v60  ;;  %v2449_v59 = vrot.slane %v162_v26, %v2272_v15 }
  0xbe   :  { %v195_v63 = vpop.permute.xlu1 %194  ;;  %492 = vmatpush1.msra.mxu0 %v448_v61  ;;  %563 = vmatpush1.msra.mxu1 %v450_v62  ;;  %v193_v5 = vpop.permute.xlu0 %192  ;;  %v405_v52 = vrot.slane %v225_v35, 4  ;;  %v2452_v61 = vrot.slane %v122_v34, %v2270_v14  ;;  %v2455_v62 = vrot.slane %v122_v34, %v2272_v15 }
  0xbf   :  { %v200_v27 = vsel %vm196_vm6, %v195_v63, %v189_v50  ;;  %v197_v32 = vsel %vm196_vm6, %v193_v5, %v195_v63  ;;  %v198_v33 = vsel %vm196_vm6, %v191_v49, %v193_v5  ;;  %v2437_v49 = vrot.slane %v122_v34, %v2267_v12 }
  0xc0   :  { %v224_v37 = vmul.f32 %v2407_v21, %v200_v27  ;;  %v226_v38 = vmul.f32 %v2412_v28, %v198_v33  ;;  %v227_v39 = vmul.f32 %v2415_v29, %v197_v32  ;;  %v2458_v63 = vrot.slane %v82_v45, %v2274_v17 }
  0xc2   :  { %v111_v8 = vpop.permute.xlu1 %110  ;;  %v109_v9 = vpop.permute.xlu0 %108  ;;  %v404_v60 = vrot.slane %v224_v37, 4  ;;  %v406_v5 = vrot.slane %v226_v38, 4  ;;  %v407_v6 = vrot.slane %v227_v39, 4 }
  0xc3   :  { %v119_v46 = vsel %vm116_vm7, %v109_v9, %v111_v8 }
  0xc4   :  { %v145_v16 = vmul.f32 %v2432_v40, %v119_v46 }
  0xc6   :  { %v115_v30 = vpop.permute.xlu1 %114  ;;  %v113_v31 = vpop.permute.xlu0 %112 }
  0xc7   :  { %v120_v26 = vsel %vm116_vm7, %v115_v30, %v109_v9  ;;  %v118_v37 = vsel %vm116_vm7, %v111_v8, %v113_v31  ;;  %v117_v9 = vsel %vm116_vm7, %v113_v31, %v115_v30  ;;  %v393_v30 = vrot.slane %v145_v16, 4 }
  0xc8   :  { %v147_v31 = vmul.f32 %v2455_v62, %v117_v9 }
  0xca   :  { %v151_v41 = vpop.permute.xlu1 %150  ;;  %v149_v44 = vpop.permute.xlu0 %148 }
  0xcb   :  { %v159_v50 = vsel %vm156_vm8, %v149_v44, %v151_v41 }
  0xcc   :  { %v185_v57 = vmul.f32 %v2425_v36, %v159_v50  ;;  %v144_v50 = vmul.f32 %v2437_v49, %v120_v26 }
  0xce   :  { %v155_v27 = vpop.permute.xlu1 %154  ;;  %v153_v32 = vpop.permute.xlu0 %152  ;;  %v445_v33 = vsel %vm439_vm2, %v185_v57, %v405_v52 }
  0xcf   :  { %v160_v35 = vsel %vm156_vm8, %v155_v27, %v149_v44  ;;  %v157_v34 = vsel %vm156_vm8, %v153_v32, %v155_v27  ;;  %v158_v17 = vsel %vm156_vm8, %v151_v41, %v153_v32  ;;  %493 = vmatprep.subr.mxu0 %v445_v33  ;;  %v2478_v44 = vrot.slane %v82_v45, %v2267_v12 }
  0xd0   :  { %v184_v38 = vmul.f32 %v2442_v51, %v160_v35  ;;  %v186_v39 = vmul.f32 %v2446_v58, %v158_v17  ;;  %v187_v46 = vmul.f32 %v2449_v59, %v157_v34  ;;  %v146_v32 = vmul.f32 %v2452_v61, %v118_v37 }
  0xd1   :  { %v2488_v12 = vrot.slane %v82_v45, %v2270_v14 }
  0xd2   :  { %v70_v52 = vpop.permute.xlu1 %69  ;;  %v68_v41 = vpop.permute.xlu0 %67  ;;  %v444_v57 = vsel %vm439_vm2, %v184_v38, %v404_v60  ;;  %v447_v8 = vsel %vm439_vm2, %v187_v46, %v407_v6  ;;  %v446_v27 = vsel %vm439_vm2, %v186_v39, %v406_v5  ;;  %v2493_v60 = vrot.slane %v82_v45, %v2272_v15  ;;  %v460_v46 = vld [vmem:[#allocation5] sm:$0xf] }
  0xd3   :  { %v80_v33 = vsel %vm77_vm9, %v68_v41, %v70_v52  ;;  %494 = vmatpush1.msra.mxu0 %v444_v57  ;;  %564 = vmatprep.subr.mxu1 %v447_v8  ;;  %v392_v5 = vrot.slane %v144_v50, 4  ;;  %v394_v17 = vrot.slane %v146_v32, 4  ;;  %v395_v38 = vrot.slane %v147_v31, 4 }
  0xd4   :  { %v105_v26 = vmul.f32 %v2458_v63, %v80_v33  ;;  %565 = vmatpush1.msra.mxu1 %v446_v27 }
  0xd6   :  { %v74_v6 = vpop.permute.xlu1 %73  ;;  %v72_v35 = vpop.permute.xlu0 %71  ;;  %v441_v34 = vsel %vm439_vm2, %v105_v26, %v393_v30 }
  0xd7   :  { %v81_v37 = vsel %vm77_vm9, %v74_v6, %v68_v41  ;;  %v78_v14 = vsel %vm77_vm9, %v72_v35, %v74_v6  ;;  %v79_v16 = vsel %vm77_vm9, %v70_v52, %v72_v35  ;;  %495 = vmatprep.subr.mxu0 %v441_v34 }
  0xd8   :  { %v104_v15 = vmul.f32 %v2478_v44, %v81_v37  ;;  %v106_v45 = vmul.f32 %v2488_v12, %v79_v16  ;;  %v107_v39 = vmul.f32 %v2493_v60, %v78_v14 }
  0xda   :  { %v440_v9 = vsel %vm439_vm2, %v104_v15, %v392_v5  ;;  %v443_v50 = vsel %vm439_vm2, %v107_v39, %v395_v38  ;;  %v442_v41 = vsel %vm439_vm2, %v106_v45, %v394_v17 }
  0xdb   :  { %496 = vmatpush1.msra.mxu0 %v440_v9  ;;  %566 = vmatprep.subr.mxu1 %v443_v50 }
  0xdc   :  { %2022 = vmatmul.mubr.msk.f32.vlgmr.msra.gmra.mxu0 %vm461_vm10, %v460_v46  ;;  %567 = vmatpush1.msra.mxu1 %v442_v41 }
  0xdd   :  { %2023 = vmatmul.mubr.msk.f32.vlgmr.msra.gmra.mxu1 %vm461_vm10, %v460_v46  ;;  %880 = vmatprep.mubr.f32.mxu0 %v3335_v0 }
  0xde   :  { %951 = vmatprep.mubr.f32.mxu1 %v3335_v0 }
 0x19c   :  { %v531_v52 = vpop.f32.mrf.mxu0 }
 0x19d   :  { %v607_v57 = vmax.f32 %v531_v52, 0.0  ;;  %v602_v8 = vpop.f32.mrf.mxu1 }
 0x19e   :  { %v533_v27 = vpop.f32.mrf.mxu0  ;;  %v609_v32 = vmax.f32 %v602_v8, 0.0 }
 0x19f   :  { %v2513_v33 = vadd.f32 %v607_v57, %v2189_v2  ;;  %v608_v30 = vmax.f32 %v533_v27, 0.0  ;;  %v604_v31 = vpop.f32.mrf.mxu1 }
 0x1a0   :  { %v2519_v5 = vadd.f32 %v609_v32, %v2187_v1  ;;  %v610_v6 = vmax.f32 %v604_v31, 0.0 }
 0x1a1   :  { %v2516_v26 = vadd.f32 %v608_v30, %v2205_v4  ;;  %711 = vrot.lane.b32.xlu0 %v2513_v33, %s2147_s0 }
 0x1a2   :  { %v2526_v35 = vadd.f32 %v610_v6, %v2197_v3 }
 0x1a3   :  { %713 = vrot.lane.b32.xlu1 %v2516_v26, %s2147_s0 }
 0x1a5   :  { %715 = vrot.lane.b32.xlu0 %v2519_v5, %s2147_s0 }
 0x1a7   :  { %717 = vrot.lane.b32.xlu1 %v2526_v35, %s2147_s0 }
 0x1a9   :  { %727 = vrot.lane.b32.xlu0 %v2513_v33, %s2148_s2 }
 0x1ab   :  { %729 = vrot.lane.b32.xlu1 %v2516_v26, %s2148_s2 }
 0x1ad   :  { %731 = vrot.lane.b32.xlu0 %v2519_v5, %s2148_s2 }
 0x1af   :  { %733 = vrot.lane.b32.xlu1 %v2526_v35, %s2148_s2 }
 0x1b1   :  { %679 = vrot.lane.b32.xlu0 %v2513_v33, %s2149_s30 }
 0x1b3   :  { %681 = vrot.lane.b32.xlu1 %v2516_v26, %s2149_s30 }
 0x1b5   :  { %683 = vrot.lane.b32.xlu0 %v2519_v5, %s2149_s30 }
 0x1b7   :  { %685 = vrot.lane.b32.xlu1 %v2526_v35, %s2149_s30 }
 0x1b9   :  { %695 = vrot.lane.b32.xlu0 %v2513_v33, %s2150_s4 }
 0x1bb   :  { %697 = vrot.lane.b32.xlu1 %v2516_v26, %s2150_s4 }
 0x1bd   :  { %699 = vrot.lane.b32.xlu0 %v2519_v5, %s2150_s4 }
 0x1bf   :  { %701 = vrot.lane.b32.xlu1 %v2526_v35, %s2150_s4 }
 0x1c1   :  { %663 = vrot.lane.b32.xlu0 %v2513_v33, %s2151_s5 }
 0x1c3   :  { %665 = vrot.lane.b32.xlu1 %v2516_v26, %s2151_s5 }
 0x1c5   :  { %667 = vrot.lane.b32.xlu0 %v2519_v5, %s2151_s5 }
 0x1c7   :  { %669 = vrot.lane.b32.xlu1 %v2526_v35, %s2151_s5 }
 0x1c9   :  { %631 = vrot.lane.b32.xlu0 %v2513_v33, %s2152_s6 }
 0x1cb   :  { %633 = vrot.lane.b32.xlu1 %v2516_v26, %s2152_s6 }
 0x1cd   :  { %635 = vrot.lane.b32.xlu0 %v2519_v5, %s2152_s6 }
 0x1cf   :  { %637 = vrot.lane.b32.xlu1 %v2526_v35, %s2152_s6 }
 0x1d1   :  { %647 = vrot.lane.b32.xlu0 %v2513_v33, %s2153_s7 }
 0x1d3   :  { %649 = vrot.lane.b32.xlu1 %v2516_v26, %s2153_s7 }
 0x1d5   :  { %651 = vrot.lane.b32.xlu0 %v2519_v5, %s2153_s7 }
 0x1d7   :  { %653 = vrot.lane.b32.xlu1 %v2526_v35, %s2153_s7 }
 0x1d9   :  { %615 = vrot.lane.b32.xlu0 %v2513_v33, %s2154_s8 }
 0x1db   :  { %617 = vrot.lane.b32.xlu1 %v2516_v26, %s2154_s8 }
 0x1dd   :  { %619 = vrot.lane.b32.xlu0 %v2519_v5, %s2154_s8 }
 0x1df   :  { %621 = vrot.lane.b32.xlu1 %v2526_v35, %s2154_s8 }
 0x213   :  { %v712_v34 = vpop.permute.xlu0 %711 }
 0x215   :  { %v714_v17 = vpop.permute.xlu1 %713 }
 0x217   :  { %v716_v37 = vpop.permute.xlu0 %715 }
 0x219   :  { %v718_v14 = vpop.permute.xlu1 %717 }
 0x21b   :  { %v728_v16 = vpop.permute.xlu0 %727 }
 0x21d   :  { %v730_v38 = vpop.permute.xlu1 %729 }
 0x21e   :  { %v737_v15 = vsel %vm356_vm1, %v728_v16, %v730_v38 }
 0x21f   :  { %v732_v45 = vpop.permute.xlu0 %731  ;;  %v739_v39 = vmul.f32 %v737_v15, %v2278_v20  ;;  %v721_v15 = vsel %vm316_vm3, %v712_v34, %v714_v17 }
 0x220   :  { %v736_v46 = vsel %vm356_vm1, %v730_v38, %v732_v45 }
 0x221   :  { %v740_v9 = vmul.f32 %v736_v46, %v2286_v23  ;;  %v734_v50 = vpop.permute.xlu1 %733  ;;  %v807_v30 = vsel %vm439_vm2, %v739_v39, %v2291_v25  ;;  %v720_v46 = vsel %vm316_vm3, %v714_v17, %v716_v37  ;;  %v719_v39 = vsel %vm316_vm3, %v716_v37, %v718_v14 }
 0x222   :  { %v735_v41 = vsel %vm356_vm1, %v732_v45, %v734_v50  ;;  %v738_v52 = vsel %vm356_vm1, %v734_v50, %v728_v16  ;;  %v722_v50 = vsel %vm316_vm3, %v718_v14, %v712_v34  ;;  %v724_v17 = vmul.f32 %v720_v46, %v2325_v47 }
 0x223   :  { %v741_v57 = vmul.f32 %v735_v41, %v2283_v22  ;;  %v742_v8 = vmul.f32 %v738_v52, %v2289_v24  ;;  %v680_v27 = vpop.permute.xlu0 %679  ;;  %v808_v32 = vsel %vm439_vm2, %v740_v9, %v2291_v25  ;;  %v726_v34 = vmul.f32 %v722_v50, %v2317_v43 }
 0x224   :  { %838 = vmatprep.subr.mxu0 %v808_v32  ;;  %v725_v32 = vmul.f32 %v719_v39, %v2314_v42 }
 0x225   :  { %v682_v31 = vpop.permute.xlu1 %681  ;;  %839 = vmatpush1.msra.mxu0 %v807_v30  ;;  %v810_v6 = vsel %vm439_vm2, %v742_v8, %v2291_v25  ;;  %v809_v16 = vsel %vm439_vm2, %v741_v57, %v2291_v25  ;;  %v723_v57 = vmul.f32 %v721_v15, %v2336_v53 }
 0x226   :  { %909 = vmatprep.subr.mxu1 %v810_v6  ;;  %v689_v41 = vsel %vm236_vm4, %v680_v27, %v682_v31 }
 0x227   :  { %910 = vmatpush1.msra.mxu1 %v809_v16  ;;  %v684_v38 = vpop.permute.xlu0 %683  ;;  %v691_v14 = vmul.f32 %v689_v41, %v2339_v54  ;;  %v783_v15 = vrot.slane %v723_v57, 4  ;;  %v786_v54 = vrot.slane %v726_v34, 4 }
 0x228   :  { %v688_v9 = vsel %vm236_vm4, %v682_v31, %v684_v38 }
 0x229   :  { %v686_v45 = vpop.permute.xlu1 %685  ;;  %v692_v37 = vmul.f32 %v688_v9, %v2342_v55  ;;  %v771_v43 = vrot.slane %v691_v14, 4 }
 0x22a   :  { %v690_v8 = vsel %vm236_vm4, %v686_v45, %v680_v27  ;;  %v687_v30 = vsel %vm236_vm4, %v684_v38, %v686_v45  ;;  %v784_v38 = vrot.slane %v724_v17, 4  ;;  %v785_v45 = vrot.slane %v725_v32, 4 }
 0x22b   :  { %v696_v52 = vpop.permute.xlu0 %695  ;;  %v694_v16 = vmul.f32 %v690_v8, %v2328_v48  ;;  %v693_v46 = vmul.f32 %v687_v30, %v2345_v56  ;;  %v772_v0 = vrot.slane %v692_v37, 4 }
 0x22d   :  { %v698_v6 = vpop.permute.xlu1 %697  ;;  %v774_v30 = vrot.slane %v694_v16, 4  ;;  %v773_v32 = vrot.slane %v693_v46, 4  ;;  %v800_v14 = vsel %vm439_vm2, %v2516_v26, %v772_v0  ;;  %v799_v16 = vsel %vm439_vm2, %v2513_v33, %v771_v43 }
 0x22e   :  { %v705_v31 = vsel %vm276_vm5, %v696_v52, %v698_v6 }
 0x22f   :  { %v700_v27 = vpop.permute.xlu0 %699  ;;  %v707_v39 = vmul.f32 %v705_v31, %v2361_v10 }
 0x230   :  { %v704_v9 = vsel %vm276_vm5, %v698_v6, %v700_v27 }
 0x231   :  { %v708_v50 = vmul.f32 %v704_v9, %v2370_v18  ;;  %v702_v41 = vpop.permute.xlu1 %701  ;;  %v803_v37 = vsel %vm439_vm2, %v707_v39, %v783_v15  ;;  %v802_v15 = vsel %vm439_vm2, %v2526_v35, %v774_v30  ;;  %v801_v39 = vsel %vm439_vm2, %v2519_v5, %v773_v32 }
 0x232   :  { %v703_v8 = vsel %vm276_vm5, %v700_v27, %v702_v41  ;;  %v706_v57 = vsel %vm276_vm5, %v702_v41, %v696_v52 }
 0x233   :  { %v709_v31 = vmul.f32 %v703_v8, %v2373_v19  ;;  %v710_v10 = vmul.f32 %v706_v57, %v2364_v7  ;;  %v664_v6 = vpop.permute.xlu0 %663  ;;  %v804_v17 = vsel %vm439_vm2, %v708_v50, %v784_v38 }
 0x234   :  { %840 = vmatprep.subr.mxu0 %v804_v17 }
 0x235   :  { %v666_v34 = vpop.permute.xlu1 %665  ;;  %841 = vmatpush1.msra.mxu0 %v803_v37  ;;  %v806_v27 = vsel %vm439_vm2, %v710_v10, %v786_v54  ;;  %v805_v52 = vsel %vm439_vm2, %v709_v31, %v785_v45 }
 0x236   :  { %842 = vmatprep.subr.mxu0 %v800_v14  ;;  %911 = vmatprep.subr.mxu1 %v806_v27  ;;  %v673_v9 = vsel %vm196_vm6, %v664_v6, %v666_v34 }
 0x237   :  { %843 = vmatpush1.msra.mxu0 %v799_v16  ;;  %912 = vmatpush1.msra.mxu1 %v805_v52  ;;  %v668_v46 = vpop.permute.xlu0 %667  ;;  %v676_v43 = vmul.f32 %v673_v9, %v2402_v13 }
 0x238   :  { %913 = vmatprep.subr.mxu1 %v802_v15  ;;  %v672_v5 = vsel %vm196_vm6, %v666_v34, %v668_v46 }
 0x239   :  { %v670_v0 = vpop.permute.xlu1 %669  ;;  %914 = vmatpush1.msra.mxu1 %v801_v39  ;;  %v760_v57 = vrot.slane %v676_v43, 4 }
 0x23a   :  { %v674_v33 = vsel %vm196_vm6, %v670_v0, %v664_v6  ;;  %v671_v35 = vsel %vm196_vm6, %v668_v46, %v670_v0  ;;  %v677_v6 = vmul.f32 %v672_v5, %v2412_v28 }
 0x23b   :  { %v632_v54 = vpop.permute.xlu0 %631  ;;  %v675_v41 = vmul.f32 %v674_v33, %v2407_v21  ;;  %v678_v30 = vmul.f32 %v671_v35, %v2415_v29 }
 0x23c   :  { %v761_v33 = vrot.slane %v677_v6, 4 }
 0x23d   :  { %v634_v10 = vpop.permute.xlu1 %633  ;;  %v759_v27 = vrot.slane %v675_v41, 4  ;;  %v762_v15 = vrot.slane %v678_v30, 4 }
 0x23e   :  { %v641_v32 = vsel %vm116_vm7, %v632_v54, %v634_v10 }
 0x23f   :  { %v636_v26 = vpop.permute.xlu0 %635  ;;  %v644_v39 = vmul.f32 %v641_v32, %v2432_v40 }
 0x241   :  { %v638_v38 = vpop.permute.xlu1 %637 }
 0x242   :  { %v639_v35 = vsel %vm116_vm7, %v636_v26, %v638_v38  ;;  %v642_v5 = vsel %vm116_vm7, %v638_v38, %v632_v54 }
 0x243   :  { %v648_v45 = vpop.permute.xlu0 %647  ;;  %v646_v54 = vmul.f32 %v639_v35, %v2455_v62 }
 0x245   :  { %v650_v50 = vpop.permute.xlu1 %649 }
 0x246   :  { %v657_v8 = vsel %vm156_vm8, %v648_v45, %v650_v50 }
 0x247   :  { %v660_v31 = vmul.f32 %v657_v8, %v2425_v36  ;;  %v652_v17 = vpop.permute.xlu0 %651 }
 0x248   :  { %v656_v37 = vsel %vm156_vm8, %v650_v50, %v652_v17  ;;  %v640_v50 = vsel %vm116_vm7, %v634_v10, %v636_v26 }
 0x249   :  { %v654_v34 = vpop.permute.xlu1 %653  ;;  %v796_v14 = vsel %vm439_vm2, %v660_v31, %v760_v57  ;;  %v661_v52 = vmul.f32 %v656_v37, %v2446_v58  ;;  %v748_v31 = vrot.slane %v644_v39, 4  ;;  %v645_v26 = vmul.f32 %v640_v50, %v2452_v61 }
 0x24a   :  { %v655_v16 = vsel %vm156_vm8, %v652_v17, %v654_v34  ;;  %v658_v46 = vsel %vm156_vm8, %v654_v34, %v648_v45  ;;  %844 = vmatprep.subr.mxu0 %v796_v14  ;;  %v643_v17 = vmul.f32 %v642_v5, %v2437_v49 }
 0x24b   :  { %v659_v0 = vmul.f32 %v658_v46, %v2442_v51  ;;  %v662_v9 = vmul.f32 %v655_v16, %v2449_v59  ;;  %v616_v43 = vpop.permute.xlu0 %615  ;;  %v797_v30 = vsel %vm439_vm2, %v661_v52, %v761_v33  ;;  %v750_v16 = vrot.slane %v646_v54, 4 }
 0x24c   :  { %v747_v52 = vrot.slane %v643_v17, 4  ;;  %v749_v39 = vrot.slane %v645_v26, 4 }
 0x24d   :  { %v618_v45 = vpop.permute.xlu1 %617  ;;  %v795_v41 = vsel %vm439_vm2, %v659_v0, %v759_v27  ;;  %v798_v8 = vsel %vm439_vm2, %v662_v9, %v762_v15  ;;  %v812_v0 = vld [vmem:[#allocation5 + $0x4] sm:$0xf] }
 0x24e   :  { %v625_v57 = vsel %vm77_vm9, %v616_v43, %v618_v45  ;;  %845 = vmatpush1.msra.mxu0 %v795_v41  ;;  %915 = vmatprep.subr.mxu1 %v798_v8 }
 0x24f   :  { %v628_v38 = vmul.f32 %v625_v57, %v2458_v63  ;;  %916 = vmatpush1.msra.mxu1 %v797_v30  ;;  %v620_v10 = vpop.permute.xlu0 %619 }
 0x250   :  { %v624_v6 = vsel %vm77_vm9, %v618_v45, %v620_v10 }
 0x251   :  { %v622_v32 = vpop.permute.xlu1 %621  ;;  %v792_v37 = vsel %vm439_vm2, %v628_v38, %v748_v31  ;;  %v629_v34 = vmul.f32 %v624_v6, %v2488_v12 }
 0x252   :  { %v623_v14 = vsel %vm77_vm9, %v620_v10, %v622_v32  ;;  %v626_v27 = vsel %vm77_vm9, %v622_v32, %v616_v43  ;;  %846 = vmatprep.subr.mxu0 %v792_v37  ;;  %v3355_v43 = vmov 0.0  }
 0x253   :  { %v627_v46 = vmul.f32 %v626_v27, %v2478_v44  ;;  %v630_v15 = vmul.f32 %v623_v14, %v2493_v60  ;;  %v793_v35 = vsel %vm439_vm2, %v629_v34, %v749_v39 }
 0x255   :  { %v791_v9 = vsel %vm439_vm2, %v627_v46, %v747_v52  ;;  %v794_v33 = vsel %vm439_vm2, %v630_v15, %v750_v16 }
 0x256   :  { %847 = vmatpush1.msra.mxu0 %v791_v9  ;;  %917 = vmatprep.subr.mxu1 %v794_v33 }
 0x257   :  { %2024 = vmatmul.mubr.msk.f32.vlgmr.msra.gmra.mxu0 %vm461_vm10, %v812_v0  ;;  %918 = vmatpush1.msra.mxu1 %v793_v35 }
 0x258   :  { %2025 = vmatmul.mubr.msk.f32.vlgmr.msra.gmra.mxu1 %vm461_vm10, %v812_v0  ;;  %1223 = vmatprep.mubr.f32.mxu0 %v3355_v43 }
 0x259   :  { %1294 = vmatprep.mubr.f32.mxu1 %v3355_v43 }
 0x317   :  { %v882_v5 = vpop.f32.mrf.mxu0 }
 0x318   :  { %v2717_v50 = vadd.f32 %v882_v5, %v2189_v2  ;;  %v953_v45 = vpop.f32.mrf.mxu1 }
 0x319   :  { %v884_v41 = vpop.f32.mrf.mxu0  ;;  %v2723_v57 = vadd.f32 %v953_v45, %v2187_v1 }
 0x31a   :  { %v2720_v8 = vadd.f32 %v884_v41, %v2205_v4  ;;  %1054 = vrot.lane.b32.xlu0 %v2717_v50, %s2147_s0  ;;  %v955_v30 = vpop.f32.mrf.mxu1 }
 0x31b   :  { %v2730_v31 = vadd.f32 %v955_v30, %v2197_v3 }
 0x31c   :  { %1056 = vrot.lane.b32.xlu1 %v2720_v8, %s2147_s0 }
 0x31e   :  { %1058 = vrot.lane.b32.xlu0 %v2723_v57, %s2147_s0 }
 0x320   :  { %1060 = vrot.lane.b32.xlu1 %v2730_v31, %s2147_s0 }
 0x322   :  { %1070 = vrot.lane.b32.xlu0 %v2717_v50, %s2148_s2 }
 0x324   :  { %1072 = vrot.lane.b32.xlu1 %v2720_v8, %s2148_s2 }
 0x326   :  { %1074 = vrot.lane.b32.xlu0 %v2723_v57, %s2148_s2 }
 0x328   :  { %1076 = vrot.lane.b32.xlu1 %v2730_v31, %s2148_s2 }
 0x32a   :  { %1022 = vrot.lane.b32.xlu0 %v2717_v50, %s2149_s30 }
 0x32c   :  { %1024 = vrot.lane.b32.xlu1 %v2720_v8, %s2149_s30 }
 0x32e   :  { %1026 = vrot.lane.b32.xlu0 %v2723_v57, %s2149_s30 }
 0x330   :  { %1028 = vrot.lane.b32.xlu1 %v2730_v31, %s2149_s30 }
 0x332   :  { %1038 = vrot.lane.b32.xlu0 %v2717_v50, %s2150_s4 }
 0x334   :  { %1040 = vrot.lane.b32.xlu1 %v2720_v8, %s2150_s4 }
 0x336   :  { %1042 = vrot.lane.b32.xlu0 %v2723_v57, %s2150_s4 }
 0x338   :  { %1044 = vrot.lane.b32.xlu1 %v2730_v31, %s2150_s4 }
 0x33a   :  { %1006 = vrot.lane.b32.xlu0 %v2717_v50, %s2151_s5 }
 0x33c   :  { %1008 = vrot.lane.b32.xlu1 %v2720_v8, %s2151_s5 }
 0x33e   :  { %1010 = vrot.lane.b32.xlu0 %v2723_v57, %s2151_s5 }
 0x340   :  { %1012 = vrot.lane.b32.xlu1 %v2730_v31, %s2151_s5 }
 0x342   :  { %974 = vrot.lane.b32.xlu0 %v2717_v50, %s2152_s6 }
 0x344   :  { %976 = vrot.lane.b32.xlu1 %v2720_v8, %s2152_s6 }
 0x346   :  { %978 = vrot.lane.b32.xlu0 %v2723_v57, %s2152_s6 }
 0x348   :  { %980 = vrot.lane.b32.xlu1 %v2730_v31, %s2152_s6 }
 0x34a   :  { %990 = vrot.lane.b32.xlu0 %v2717_v50, %s2153_s7 }
 0x34c   :  { %992 = vrot.lane.b32.xlu1 %v2720_v8, %s2153_s7 }
 0x34e   :  { %994 = vrot.lane.b32.xlu0 %v2723_v57, %s2153_s7 }
 0x350   :  { %996 = vrot.lane.b32.xlu1 %v2730_v31, %s2153_s7 }
 0x352   :  { %958 = vrot.lane.b32.xlu0 %v2717_v50, %s2154_s8 }
 0x354   :  { %960 = vrot.lane.b32.xlu1 %v2720_v8, %s2154_s8 }
 0x356   :  { %962 = vrot.lane.b32.xlu0 %v2723_v57, %s2154_s8 }
 0x358   :  { %964 = vrot.lane.b32.xlu1 %v2730_v31, %s2154_s8 }
 0x38c   :  { %v1055_v1 = vpop.permute.xlu0 %1054 }
 0x38e   :  { %v1057_v2 = vpop.permute.xlu1 %1056 }
 0x38f   :  { %v1064_v45 = vsel %vm316_vm3, %v1055_v1, %v1057_v2 }
 0x390   :  { %v1059_v17 = vpop.permute.xlu0 %1058 }
 0x391   :  { %v1063_v30 = vsel %vm316_vm3, %v1057_v2, %v1059_v17 }
 0x392   :  { %v1061_v54 = vpop.permute.xlu1 %1060  ;;  %v1067_v2 = vmul.f32 %v1063_v30, %v2325_v47 }
 0x394   :  { %v1071_v38 = vpop.permute.xlu0 %1070 }
 0x396   :  { %v1073_v10 = vpop.permute.xlu1 %1072 }
 0x397   :  { %v1080_v26 = vsel %vm356_vm1, %v1071_v38, %v1073_v10 }
 0x398   :  { %v1075_v6 = vpop.permute.xlu0 %1074  ;;  %v1082_v32 = vmul.f32 %v1080_v26, %v2278_v20  ;;  %v1065_v26 = vsel %vm316_vm3, %v1061_v54, %v1055_v1  ;;  %v3356_v1 = vld [vmem:[#allocation14_spill] sm:$0xff] }
 0x399   :  { %v1079_v37 = vsel %vm356_vm1, %v1073_v10, %v1075_v6 }
 0x39a   :  { %v1083_v34 = vmul.f32 %v1079_v37, %v2286_v23  ;;  %v1077_v14 = vpop.permute.xlu1 %1076  ;;  %v1150_v0 = vsel %vm439_vm2, %v1082_v32, %v2291_v25  ;;  %v1066_v37 = vmul.f32 %v1064_v45, %v2336_v53 }
 0x39b   :  { %v1078_v27 = vsel %vm356_vm1, %v1075_v6, %v1077_v14  ;;  %v1081_v52 = vsel %vm356_vm1, %v1077_v14, %v1071_v38  ;;  %v1062_v38 = vsel %vm316_vm3, %v1059_v17, %v1061_v54  ;;  %v1069_v54 = vmul.f32 %v1065_v26, %v3356_v1 }
 0x39c   :  { %v1084_v16 = vmul.f32 %v1078_v27, %v2283_v22  ;;  %v1085_v46 = vmul.f32 %v1081_v52, %v2289_v24  ;;  %v1023_v15 = vpop.permute.xlu0 %1022  ;;  %v1151_v39 = vsel %vm439_vm2, %v1083_v34, %v2291_v25  ;;  %v1068_v14 = vmul.f32 %v1062_v38, %v2314_v42 }
 0x39d   :  { %1181 = vmatprep.subr.mxu0 %v1151_v39 }
 0x39e   :  { %v1025_v9 = vpop.permute.xlu1 %1024  ;;  %1182 = vmatpush1.msra.mxu0 %v1150_v0  ;;  %v1153_v33 = vsel %vm439_vm2, %v1085_v46, %v2291_v25  ;;  %v1152_v35 = vsel %vm439_vm2, %v1084_v16, %v2291_v25  ;;  %v3357_v16 = vld [vmem:[#allocation15_spill] sm:$0xff] }
 0x39f   :  { %1252 = vmatprep.subr.mxu1 %v1153_v33  ;;  %v1032_v6 = vsel %vm236_vm4, %v1023_v15, %v1025_v9 }
 0x3a0   :  { %1253 = vmatpush1.msra.mxu1 %v1152_v35  ;;  %v1027_v5 = vpop.permute.xlu0 %1026  ;;  %v1034_v46 = vmul.f32 %v1032_v6, %v3357_v16  ;;  %v3358_v35 = vld [vmem:[#allocation17_spill] sm:$0xff]  ;;  %v1129_v6 = vrot.slane %v1069_v54, 4 }
 0x3a1   :  { %v1031_v10 = vsel %vm236_vm4, %v1025_v9, %v1027_v5  ;;  %v1126_v9 = vrot.slane %v1066_v37, 4 }
 0x3a2   :  { %v1029_v41 = vpop.permute.xlu1 %1028  ;;  %v1035_v17 = vmul.f32 %v1031_v10, %v2342_v55  ;;  %v1114_v3 = vrot.slane %v1034_v46, 4 }
 0x3a3   :  { %v1033_v34 = vsel %vm236_vm4, %v1029_v41, %v1023_v15  ;;  %v1030_v27 = vsel %vm236_vm4, %v1027_v5, %v1029_v41  ;;  %v1127_v5 = vrot.slane %v1067_v2, 4  ;;  %v1128_v41 = vrot.slane %v1068_v14, 4 }
 0x3a4   :  { %v1039_v32 = vpop.permute.xlu0 %1038  ;;  %v1037_v0 = vmul.f32 %v1033_v34, %v2328_v48  ;;  %v1036_v33 = vmul.f32 %v1030_v27, %v2345_v56  ;;  %v1115_v38 = vrot.slane %v1035_v17, 4 }
 0x3a6   :  { %v1041_v52 = vpop.permute.xlu1 %1040  ;;  %v1117_v27 = vrot.slane %v1037_v0, 4  ;;  %v1116_v14 = vrot.slane %v1036_v33, 4  ;;  %v1143_v46 = vsel %vm439_vm2, %v2720_v8, %v1115_v38  ;;  %v1142_v0 = vsel %vm439_vm2, %v2717_v50, %v1114_v3 }
 0x3a7   :  { %v1048_v39 = vsel %vm276_vm5, %v1039_v32, %v1041_v52 }
 0x3a8   :  { %v1043_v15 = vpop.permute.xlu0 %1042  ;;  %v1050_v45 = vmul.f32 %v1048_v39, %v3358_v35 }
 0x3a9   :  { %v1047_v30 = vsel %vm276_vm5, %v1041_v52, %v1043_v15 }
 0x3aa   :  { %v1051_v10 = vmul.f32 %v1047_v30, %v2370_v18  ;;  %v1045_v26 = vpop.permute.xlu1 %1044  ;;  %v1146_v17 = vsel %vm439_vm2, %v1050_v45, %v1126_v9  ;;  %v1145_v9 = vsel %vm439_vm2, %v2730_v31, %v1117_v27  ;;  %v1144_v45 = vsel %vm439_vm2, %v2723_v57, %v1116_v14 }
 0x3ab   :  { %v1046_v34 = vsel %vm276_vm5, %v1043_v15, %v1045_v26  ;;  %v1049_v37 = vsel %vm276_vm5, %v1045_v26, %v1039_v32 }
 0x3ac   :  { %v1052_v39 = vmul.f32 %v1046_v34, %v2373_v19  ;;  %v1053_v4 = vmul.f32 %v1049_v37, %v2364_v7  ;;  %v1007_v52 = vpop.permute.xlu0 %1006  ;;  %v1147_v2 = vsel %vm439_vm2, %v1051_v10, %v1127_v5 }
 0x3ad   :  { %1183 = vmatprep.subr.mxu0 %v1147_v2 }
 0x3ae   :  { %v1009_v54 = vpop.permute.xlu1 %1008  ;;  %1184 = vmatpush1.msra.mxu0 %v1146_v17  ;;  %v1149_v15 = vsel %vm439_vm2, %v1053_v4, %v1129_v6  ;;  %v1148_v32 = vsel %vm439_vm2, %v1052_v39, %v1128_v41 }
 0x3af   :  { %1185 = vmatprep.subr.mxu0 %v1143_v46  ;;  %1254 = vmatprep.subr.mxu1 %v1149_v15  ;;  %v1016_v38 = vsel %vm196_vm6, %v1007_v52, %v1009_v54 }
 0x3b0   :  { %1186 = vmatpush1.msra.mxu0 %v1142_v0  ;;  %1255 = vmatpush1.msra.mxu1 %v1148_v32  ;;  %v1011_v33 = vpop.permute.xlu0 %1010  ;;  %v1019_v3 = vmul.f32 %v1016_v38, %v2402_v13 }
 0x3b1   :  { %1256 = vmatprep.subr.mxu1 %v1145_v9  ;;  %v1015_v37 = vsel %vm196_vm6, %v1009_v54, %v1011_v33 }
 0x3b2   :  { %v1013_v30 = vpop.permute.xlu1 %1012  ;;  %1257 = vmatpush1.msra.mxu1 %v1144_v45  ;;  %v1103_v14 = vrot.slane %v1019_v3, 4 }
 0x3b3   :  { %v1017_v26 = vsel %vm196_vm6, %v1013_v30, %v1007_v52  ;;  %v1014_v34 = vsel %vm196_vm6, %v1011_v33, %v1013_v30  ;;  %v1020_v52 = vmul.f32 %v1015_v37, %v2412_v28 }
 0x3b4   :  { %v975_v4 = vpop.permute.xlu0 %974  ;;  %v1018_v39 = vmul.f32 %v1017_v26, %v2407_v21  ;;  %v1021_v17 = vmul.f32 %v1014_v34, %v2415_v29 }
 0x3b6   :  { %v977_v5 = vpop.permute.xlu1 %976  ;;  %v1102_v9 = vrot.slane %v1018_v39, 4  ;;  %v1105_v3 = vrot.slane %v1021_v17, 4 }
 0x3b7   :  { %v984_v32 = vsel %vm116_vm7, %v975_v4, %v977_v5 }
 0x3b8   :  { %v979_v41 = vpop.permute.xlu0 %978  ;;  %v987_v26 = vmul.f32 %v984_v32, %v2432_v40 }
 0x3ba   :  { %v981_v10 = vpop.permute.xlu1 %980 }
 0x3bb   :  { %v982_v39 = vsel %vm116_vm7, %v979_v41, %v981_v10 }
 0x3bc   :  { %v991_v6 = vpop.permute.xlu0 %990 }
 0x3be   :  { %v993_v27 = vpop.permute.xlu1 %992 }
 0x3bf   :  { %v1000_v2 = vsel %vm156_vm8, %v991_v6, %v993_v27 }
 0x3c0   :  { %v1003_v46 = vmul.f32 %v1000_v2, %v2425_v36  ;;  %v995_v15 = vpop.permute.xlu0 %994  ;;  %v1104_v2 = vrot.slane %v1020_v52, 4 }
 0x3c1   :  { %v999_v54 = vsel %vm156_vm8, %v993_v27, %v995_v15 }
 0x3c2   :  { %v997_v0 = vpop.permute.xlu1 %996  ;;  %v1139_v33 = vsel %vm439_vm2, %v1003_v46, %v1103_v14  ;;  %v1004_v45 = vmul.f32 %v999_v54, %v2446_v58  ;;  %v985_v14 = vsel %vm116_vm7, %v981_v10, %v975_v4  ;;  %v983_v46 = vsel %vm116_vm7, %v977_v5, %v979_v41 }
 0x3c3   :  { %v998_v30 = vsel %vm156_vm8, %v995_v15, %v997_v0  ;;  %v1001_v38 = vsel %vm156_vm8, %v997_v0, %v991_v6  ;;  %1187 = vmatprep.subr.mxu0 %v1139_v33  ;;  %v1091_v54 = vrot.slane %v987_v26, 4  ;;  %v986_v0 = vmul.f32 %v985_v14, %v2437_v49  ;;  %v1155_v14 = vld [vmem:[#allocation5 + $0x8] sm:$0xf] }
 0x3c4   :  { %v1002_v34 = vmul.f32 %v1001_v38, %v2442_v51  ;;  %v1005_v37 = vmul.f32 %v998_v30, %v2449_v59  ;;  %v959_v27 = vpop.permute.xlu0 %958  ;;  %v1140_v52 = vsel %vm439_vm2, %v1004_v45, %v1104_v2  ;;  %v989_v4 = vmul.f32 %v982_v39, %v2455_v62 }
 0x3c5   :  { %v988_v41 = vmul.f32 %v983_v46, %v2452_v61  ;;  %v1090_v26 = vrot.slane %v986_v0, 4 }
 0x3c6   :  { %v961_v6 = vpop.permute.xlu1 %960  ;;  %v1138_v17 = vsel %vm439_vm2, %v1002_v34, %v1102_v9  ;;  %v1141_v15 = vsel %vm439_vm2, %v1005_v37, %v1105_v3  ;;  %v1093_v34 = vrot.slane %v989_v4, 4 }
 0x3c7   :  { %v968_v32 = vsel %vm77_vm9, %v959_v27, %v961_v6  ;;  %1188 = vmatpush1.msra.mxu0 %v1138_v17  ;;  %1258 = vmatprep.subr.mxu1 %v1141_v15  ;;  %v1092_v39 = vrot.slane %v988_v41, 4 }
 0x3c8   :  { %v971_v10 = vmul.f32 %v968_v32, %v2458_v63  ;;  %1259 = vmatpush1.msra.mxu1 %v1140_v52  ;;  %v963_v5 = vpop.permute.xlu0 %962 }
 0x3c9   :  { %v967_v33 = vsel %vm77_vm9, %v961_v6, %v963_v5 }
 0x3ca   :  { %v965_v9 = vpop.permute.xlu1 %964  ;;  %v1135_v30 = vsel %vm439_vm2, %v971_v10, %v1091_v54  ;;  %v972_v38 = vmul.f32 %v967_v33, %v2488_v12 }
 0x3cb   :  { %v966_v45 = vsel %vm77_vm9, %v963_v5, %v965_v9  ;;  %v969_v3 = vsel %vm77_vm9, %v965_v9, %v959_v27  ;;  %1189 = vmatprep.subr.mxu0 %v1135_v30 }
 0x3cc   :  { %v970_v37 = vmul.f32 %v969_v3, %v2478_v44  ;;  %v973_v2 = vmul.f32 %v966_v45, %v2493_v60  ;;  %v1136_v17 = vsel %vm439_vm2, %v972_v38, %v1092_v39 }
 0x3ce   :  { %v1134_v46 = vsel %vm439_vm2, %v970_v37, %v1090_v26  ;;  %v1137_v6 = vsel %vm439_vm2, %v973_v2, %v1093_v34 }
 0x3cf   :  { %1190 = vmatpush1.msra.mxu0 %v1134_v46  ;;  %1260 = vmatprep.subr.mxu1 %v1137_v6 }
 0x3d0   :  { %2026 = vmatmul.mubr.msk.f32.vlgmr.msra.gmra.mxu0 %vm461_vm10, %v1155_v14  ;;  %1261 = vmatpush1.msra.mxu1 %v1136_v17 }
 0x3d1   :  { %2027 = vmatmul.mubr.msk.f32.vlgmr.msra.gmra.mxu1 %vm461_vm10, %v1155_v14  ;;  %1574 = vmatprep.mubr.f32.mxu0 %v3355_v43 }
 0x3d2   :  { %1645 = vmatprep.mubr.f32.mxu1 %v3355_v43 }
 0x490   :  { %v1225_v27 = vpop.f32.mrf.mxu0 }
 0x491   :  { %v1301_v15 = vmax.f32 %v1225_v27, 0.0  ;;  %v1296_v32 = vpop.f32.mrf.mxu1 }
 0x492   :  { %v1227_v52 = vpop.f32.mrf.mxu0  ;;  %v1303_v0 = vmax.f32 %v1296_v32, 0.0 }
 0x493   :  { %v2921_v54 = vadd.f32 %v1301_v15, %v2717_v50  ;;  %v1302_v4 = vmax.f32 %v1227_v52, 0.0  ;;  %v1298_v10 = vpop.f32.mrf.mxu1 }
 0x494   :  { %v1304_v41 = vmax.f32 %v1298_v10, 0.0  ;;  %v2929_v33 = vadd.f32 %v1303_v0, %v2723_v57 }
 0x495   :  { %v2924_v5 = vadd.f32 %v1302_v4, %v2720_v8  ;;  %1405 = vrot.lane.b32.xlu0 %v2921_v54, %s2147_s0 }
 0x496   :  { %v2934_v9 = vadd.f32 %v1304_v41, %v2730_v31 }
 0x497   :  { %1407 = vrot.lane.b32.xlu1 %v2924_v5, %s2147_s0 }
 0x499   :  { %1409 = vrot.lane.b32.xlu0 %v2929_v33, %s2147_s0 }
 0x49b   :  { %1411 = vrot.lane.b32.xlu1 %v2934_v9, %s2147_s0 }
 0x49d   :  { %1421 = vrot.lane.b32.xlu0 %v2921_v54, %s2148_s2 }
 0x49f   :  { %1423 = vrot.lane.b32.xlu1 %v2924_v5, %s2148_s2 }
 0x4a1   :  { %1425 = vrot.lane.b32.xlu0 %v2929_v33, %s2148_s2 }
 0x4a3   :  { %1427 = vrot.lane.b32.xlu1 %v2934_v9, %s2148_s2 }
 0x4a5   :  { %1373 = vrot.lane.b32.xlu0 %v2921_v54, %s2149_s30 }
 0x4a7   :  { %1375 = vrot.lane.b32.xlu1 %v2924_v5, %s2149_s30 }
 0x4a9   :  { %1377 = vrot.lane.b32.xlu0 %v2929_v33, %s2149_s30 }
 0x4ab   :  { %1379 = vrot.lane.b32.xlu1 %v2934_v9, %s2149_s30 }
 0x4ad   :  { %1389 = vrot.lane.b32.xlu0 %v2921_v54, %s2150_s4 }
 0x4af   :  { %1391 = vrot.lane.b32.xlu1 %v2924_v5, %s2150_s4 }
 0x4b1   :  { %1393 = vrot.lane.b32.xlu0 %v2929_v33, %s2150_s4 }
 0x4b3   :  { %1395 = vrot.lane.b32.xlu1 %v2934_v9, %s2150_s4 }
 0x4b5   :  { %1357 = vrot.lane.b32.xlu0 %v2921_v54, %s2151_s5 }
 0x4b7   :  { %1359 = vrot.lane.b32.xlu1 %v2924_v5, %s2151_s5 }
 0x4b9   :  { %1361 = vrot.lane.b32.xlu0 %v2929_v33, %s2151_s5 }
 0x4bb   :  { %1363 = vrot.lane.b32.xlu1 %v2934_v9, %s2151_s5 }
 0x4bd   :  { %1325 = vrot.lane.b32.xlu0 %v2921_v54, %s2152_s6 }
 0x4bf   :  { %1327 = vrot.lane.b32.xlu1 %v2924_v5, %s2152_s6 }
 0x4c1   :  { %1329 = vrot.lane.b32.xlu0 %v2929_v33, %s2152_s6 }
 0x4c3   :  { %1331 = vrot.lane.b32.xlu1 %v2934_v9, %s2152_s6 }
 0x4c5   :  { %1341 = vrot.lane.b32.xlu0 %v2921_v54, %s2153_s7 }
 0x4c7   :  { %1343 = vrot.lane.b32.xlu1 %v2924_v5, %s2153_s7 }
 0x4c9   :  { %1345 = vrot.lane.b32.xlu0 %v2929_v33, %s2153_s7 }
 0x4cb   :  { %1347 = vrot.lane.b32.xlu1 %v2934_v9, %s2153_s7 }
 0x4cd   :  { %1309 = vrot.lane.b32.xlu0 %v2921_v54, %s2154_s8 }
 0x4cf   :  { %1311 = vrot.lane.b32.xlu1 %v2924_v5, %s2154_s8 }
 0x4d1   :  { %1313 = vrot.lane.b32.xlu0 %v2929_v33, %s2154_s8 }
 0x4d3   :  { %1315 = vrot.lane.b32.xlu1 %v2934_v9, %s2154_s8 }
 0x507   :  { %v1406_v30 = vpop.permute.xlu0 %1405 }
 0x509   :  { %v1408_v38 = vpop.permute.xlu1 %1407 }
 0x50b   :  { %v1410_v45 = vpop.permute.xlu0 %1409 }
 0x50d   :  { %v1412_v3 = vpop.permute.xlu1 %1411 }
 0x50f   :  { %v1422_v26 = vpop.permute.xlu0 %1421 }
 0x511   :  { %v1424_v34 = vpop.permute.xlu1 %1423 }
 0x512   :  { %v1431_v37 = vsel %vm356_vm1, %v1422_v26, %v1424_v34 }
 0x513   :  { %v1426_v2 = vpop.permute.xlu0 %1425  ;;  %v1433_v39 = vmul.f32 %v1431_v37, %v2278_v20  ;;  %v1415_v37 = vsel %vm316_vm3, %v1406_v30, %v1408_v38 }
 0x514   :  { %v1430_v14 = vsel %vm356_vm1, %v1424_v34, %v1426_v2 }
 0x515   :  { %v1434_v46 = vmul.f32 %v1430_v14, %v2286_v23  ;;  %v1428_v6 = vpop.permute.xlu1 %1427  ;;  %v1501_v4 = vsel %vm439_vm2, %v1433_v39, %v2291_v25  ;;  %v1414_v14 = vsel %vm316_vm3, %v1408_v38, %v1410_v45  ;;  %v1413_v39 = vsel %vm316_vm3, %v1410_v45, %v1412_v3 }
 0x516   :  { %v1429_v17 = vsel %vm356_vm1, %v1426_v2, %v1428_v6  ;;  %v1432_v27 = vsel %vm356_vm1, %v1428_v6, %v1422_v26  ;;  %v1416_v6 = vsel %vm316_vm3, %v1412_v3, %v1406_v30  ;;  %v1418_v38 = vmul.f32 %v1414_v14, %v2325_v47 }
 0x517   :  { %v1435_v15 = vmul.f32 %v1429_v17, %v2283_v22  ;;  %v1436_v32 = vmul.f32 %v1432_v27, %v2289_v24  ;;  %v1374_v52 = vpop.permute.xlu0 %1373  ;;  %v1502_v0 = vsel %vm439_vm2, %v1434_v46, %v2291_v25  ;;  %v1420_v30 = vmul.f32 %v1416_v6, %v3356_v1 }
 0x518   :  { %1532 = vmatprep.subr.mxu0 %v1502_v0  ;;  %v1419_v0 = vmul.f32 %v1413_v39, %v2314_v42 }
 0x519   :  { %v1376_v10 = vpop.permute.xlu1 %1375  ;;  %1533 = vmatpush1.msra.mxu0 %v1501_v4  ;;  %v1504_v41 = vsel %vm439_vm2, %v1436_v32, %v2291_v25  ;;  %v1503_v26 = vsel %vm439_vm2, %v1435_v15, %v2291_v25  ;;  %v1417_v15 = vmul.f32 %v1415_v37, %v2336_v53 }
 0x51a   :  { %1603 = vmatprep.subr.mxu1 %v1504_v41  ;;  %v1383_v17 = vsel %vm236_vm4, %v1374_v52, %v1376_v10 }
 0x51b   :  { %1604 = vmatpush1.msra.mxu1 %v1503_v26  ;;  %v1378_v34 = vpop.permute.xlu0 %1377  ;;  %v1385_v3 = vmul.f32 %v1383_v17, %v3357_v16  ;;  %v1477_v37 = vrot.slane %v1417_v15, 4  ;;  %v1480_v16 = vrot.slane %v1420_v30, 4 }
 0x51c   :  { %v1382_v46 = vsel %vm236_vm4, %v1376_v10, %v1378_v34 }
 0x51d   :  { %v1380_v2 = vpop.permute.xlu1 %1379  ;;  %v1386_v45 = vmul.f32 %v1382_v46, %v2342_v55  ;;  %v1465_v1 = vrot.slane %v1385_v3, 4 }
 0x51e   :  { %v1384_v32 = vsel %vm236_vm4, %v1380_v2, %v1374_v52  ;;  %v1381_v4 = vsel %vm236_vm4, %v1378_v34, %v1380_v2  ;;  %v1478_v34 = vrot.slane %v1418_v38, 4  ;;  %v1479_v2 = vrot.slane %v1419_v0, 4 }
 0x51f   :  { %v1390_v27 = vpop.permute.xlu0 %1389  ;;  %v1388_v26 = vmul.f32 %v1384_v32, %v2328_v48  ;;  %v1387_v14 = vmul.f32 %v1381_v4, %v2345_v56  ;;  %v1466_v55 = vrot.slane %v1386_v45, 4 }
 0x521   :  { %v1392_v41 = vpop.permute.xlu1 %1391  ;;  %v1468_v4 = vrot.slane %v1388_v26, 4  ;;  %v1467_v0 = vrot.slane %v1387_v14, 4  ;;  %v1494_v3 = vsel %vm439_vm2, %v2924_v5, %v1466_v55  ;;  %v1493_v26 = vsel %vm439_vm2, %v2921_v54, %v1465_v1 }
 0x522   :  { %v1399_v10 = vsel %vm276_vm5, %v1390_v27, %v1392_v41 }
 0x523   :  { %v1394_v52 = vpop.permute.xlu0 %1393  ;;  %v1401_v39 = vmul.f32 %v1399_v10, %v3358_v35 }
 0x524   :  { %v1398_v46 = vsel %vm276_vm5, %v1392_v41, %v1394_v52 }
 0x525   :  { %v1402_v6 = vmul.f32 %v1398_v46, %v2370_v18  ;;  %v1396_v17 = vpop.permute.xlu1 %1395  ;;  %v1497_v45 = vsel %vm439_vm2, %v1401_v39, %v1477_v37  ;;  %v1496_v37 = vsel %vm439_vm2, %v2934_v9, %v1468_v4  ;;  %v1495_v39 = vsel %vm439_vm2, %v2929_v33, %v1467_v0 }
 0x526   :  { %v1397_v32 = vsel %vm276_vm5, %v1394_v52, %v1396_v17  ;;  %v1400_v15 = vsel %vm276_vm5, %v1396_v17, %v1390_v27 }
 0x527   :  { %v1403_v10 = vmul.f32 %v1397_v32, %v2373_v19  ;;  %v1404_v35 = vmul.f32 %v1400_v15, %v2364_v7  ;;  %v1358_v41 = vpop.permute.xlu0 %1357  ;;  %v1498_v38 = vsel %vm439_vm2, %v1402_v6, %v1478_v34 }
 0x528   :  { %1534 = vmatprep.subr.mxu0 %v1498_v38 }
 0x529   :  { %v1360_v30 = vpop.permute.xlu1 %1359  ;;  %1535 = vmatpush1.msra.mxu0 %v1497_v45  ;;  %v1500_v52 = vsel %vm439_vm2, %v1404_v35, %v1480_v16  ;;  %v1499_v27 = vsel %vm439_vm2, %v1403_v10, %v1479_v2 }
 0x52a   :  { %1536 = vmatprep.subr.mxu0 %v1494_v3  ;;  %1605 = vmatprep.subr.mxu1 %v1500_v52  ;;  %v1367_v46 = vsel %vm196_vm6, %v1358_v41, %v1360_v30 }
 0x52b   :  { %1537 = vmatpush1.msra.mxu0 %v1493_v26  ;;  %1606 = vmatpush1.msra.mxu1 %v1499_v27  ;;  %v1362_v14 = vpop.permute.xlu0 %1361  ;;  %v1370_v1 = vmul.f32 %v1367_v46, %v2402_v13 }
 0x52c   :  { %1607 = vmatprep.subr.mxu1 %v1496_v37  ;;  %v1366_v33 = vsel %vm196_vm6, %v1360_v30, %v1362_v14 }
 0x52d   :  { %v1364_v55 = vpop.permute.xlu1 %1363  ;;  %1608 = vmatpush1.msra.mxu1 %v1495_v39  ;;  %v1454_v15 = vrot.slane %v1370_v1, 4 }
 0x52e   :  { %v1368_v54 = vsel %vm196_vm6, %v1364_v55, %v1358_v41  ;;  %v1365_v9 = vsel %vm196_vm6, %v1362_v14, %v1364_v55  ;;  %v1371_v41 = vmul.f32 %v1366_v33, %v2412_v28 }
 0x52f   :  { %v1326_v16 = vpop.permute.xlu0 %1325  ;;  %v1369_v17 = vmul.f32 %v1368_v54, %v2407_v21  ;;  %v1372_v4 = vmul.f32 %v1365_v9, %v2415_v29 }
 0x530   :  { %v1455_v54 = vrot.slane %v1371_v41, 4 }
 0x531   :  { %v1328_v35 = vpop.permute.xlu1 %1327  ;;  %v1453_v52 = vrot.slane %v1369_v17, 4  ;;  %v1456_v37 = vrot.slane %v1372_v4, 4 }
 0x532   :  { %v1335_v0 = vsel %vm116_vm7, %v1326_v16, %v1328_v35 }
 0x533   :  { %v1330_v5 = vpop.permute.xlu0 %1329  ;;  %v1338_v39 = vmul.f32 %v1335_v0, %v2432_v40 }
 0x535   :  { %v1332_v34 = vpop.permute.xlu1 %1331 }
 0x536   :  { %v1333_v9 = vsel %vm116_vm7, %v1330_v5, %v1332_v34  ;;  %v1336_v33 = vsel %vm116_vm7, %v1332_v34, %v1326_v16 }
 0x537   :  { %v1342_v2 = vpop.permute.xlu0 %1341  ;;  %v1340_v16 = vmul.f32 %v1333_v9, %v2455_v62 }
 0x539   :  { %v1344_v6 = vpop.permute.xlu1 %1343 }
 0x53a   :  { %v1351_v32 = vsel %vm156_vm8, %v1342_v2, %v1344_v6 }
 0x53b   :  { %v1354_v10 = vmul.f32 %v1351_v32, %v2425_v36  ;;  %v1346_v38 = vpop.permute.xlu0 %1345 }
 0x53c   :  { %v1350_v45 = vsel %vm156_vm8, %v1344_v6, %v1346_v38  ;;  %v1334_v6 = vsel %vm116_vm7, %v1328_v35, %v1330_v5 }
 0x53d   :  { %v1348_v30 = vpop.permute.xlu1 %1347  ;;  %v1490_v3 = vsel %vm439_vm2, %v1354_v10, %v1454_v15  ;;  %v1355_v27 = vmul.f32 %v1350_v45, %v2446_v58  ;;  %v1442_v10 = vrot.slane %v1338_v39, 4  ;;  %v1339_v5 = vmul.f32 %v1334_v6, %v2452_v61 }
 0x53e   :  { %v1349_v26 = vsel %vm156_vm8, %v1346_v38, %v1348_v30  ;;  %v1352_v14 = vsel %vm156_vm8, %v1348_v30, %v1342_v2  ;;  %1538 = vmatprep.subr.mxu0 %v1490_v3  ;;  %v1337_v38 = vmul.f32 %v1336_v33, %v2437_v49 }
 0x53f   :  { %v1353_v55 = vmul.f32 %v1352_v14, %v2442_v51  ;;  %v1356_v46 = vmul.f32 %v1349_v26, %v2449_v59  ;;  %v1310_v1 = vpop.permute.xlu0 %1309  ;;  %v1491_v4 = vsel %vm439_vm2, %v1355_v27, %v1455_v54  ;;  %v1444_v26 = vrot.slane %v1340_v16, 4 }
 0x540   :  { %v1441_v27 = vrot.slane %v1337_v38, 4  ;;  %v1443_v39 = vrot.slane %v1339_v5, 4 }
 0x541   :  { %v1312_v2 = vpop.permute.xlu1 %1311  ;;  %v1489_v17 = vsel %vm439_vm2, %v1353_v55, %v1453_v52  ;;  %v1492_v32 = vsel %vm439_vm2, %v1356_v46, %v1456_v37  ;;  %v1506_v55 = vld [vmem:[#allocation5 + $0xc] sm:$0xf] }
 0x542   :  { %v1319_v15 = vsel %vm77_vm9, %v1310_v1, %v1312_v2  ;;  %1539 = vmatpush1.msra.mxu0 %v1489_v17  ;;  %1609 = vmatprep.subr.mxu1 %v1492_v32 }
 0x543   :  { %v1322_v34 = vmul.f32 %v1319_v15, %v2458_v63  ;;  %1610 = vmatpush1.msra.mxu1 %v1491_v4  ;;  %v1314_v35 = vpop.permute.xlu0 %1313 }
 0x544   :  { %v1318_v41 = vsel %vm77_vm9, %v1312_v2, %v1314_v35 }
 0x545   :  { %v1316_v0 = vpop.permute.xlu1 %1315  ;;  %v1486_v45 = vsel %vm439_vm2, %v1322_v34, %v1442_v10  ;;  %v1323_v30 = vmul.f32 %v1318_v41, %v2488_v12 }
 0x546   :  { %v1317_v3 = vsel %vm77_vm9, %v1314_v35, %v1316_v0  ;;  %v1320_v52 = vsel %vm77_vm9, %v1316_v0, %v1310_v1  ;;  %1540 = vmatprep.subr.mxu0 %v1486_v45 }
 0x547   :  { %v1321_v14 = vmul.f32 %v1320_v52, %v2478_v44  ;;  %v1324_v37 = vmul.f32 %v1317_v3, %v2493_v60  ;;  %v1487_v9 = vsel %vm439_vm2, %v1323_v30, %v1443_v39 }
 0x549   :  { %v1485_v46 = vsel %vm439_vm2, %v1321_v14, %v1441_v27  ;;  %v1488_v54 = vsel %vm439_vm2, %v1324_v37, %v1444_v26 }
 0x54a   :  { %1541 = vmatpush1.msra.mxu0 %v1485_v46  ;;  %1611 = vmatprep.subr.mxu1 %v1488_v54 }
 0x54b   :  { %2028 = vmatmul.mubr.msk.f32.vlgmr.msra.gmra.mxu0 %vm461_vm10, %v1506_v55  ;;  %1612 = vmatpush1.msra.mxu1 %v1487_v9 }
 0x54c   :  { %2029 = vmatmul.mubr.msk.f32.vlgmr.msra.gmra.mxu1 %vm461_vm10, %v1506_v55  ;;  %1917 = vmatprep.mubr.f32.mxu0 %v3355_v43 }
 0x54d   :  { %1988 = vmatprep.mubr.f32.mxu1 %v3355_v43 }
 0x60b   :  { %v1576_v1 = vpop.f32.mrf.mxu0 }
 0x60c   :  { %v3125_v33 = vadd.f32 %v1576_v1, %v2717_v50  ;;  %v1647_v6 = vpop.f32.mrf.mxu1 }
 0x60d   :  { %v1578_v2 = vpop.f32.mrf.mxu0  ;;  %v3133_v15 = vadd.f32 %v1647_v6, %v2723_v57 }
 0x60e   :  { %v3128_v17 = vadd.f32 %v1578_v2, %v2720_v8  ;;  %1748 = vrot.lane.b32.xlu0 %v3125_v33, %s2147_s0  ;;  %v1649_v32 = vpop.f32.mrf.mxu1 }
 0x60f   :  { %v3138_v43 = vadd.f32 %v1649_v32, %v2730_v31 }
 0x610   :  { %1750 = vrot.lane.b32.xlu1 %v3128_v17, %s2147_s0 }
 0x612   :  { %1752 = vrot.lane.b32.xlu0 %v3133_v15, %s2147_s0 }
 0x614   :  { %1754 = vrot.lane.b32.xlu1 %v3138_v43, %s2147_s0 }
 0x616   :  { %1764 = vrot.lane.b32.xlu0 %v3125_v33, %s2148_s2 }
 0x618   :  { %1766 = vrot.lane.b32.xlu1 %v3128_v17, %s2148_s2 }
 0x61a   :  { %1768 = vrot.lane.b32.xlu0 %v3133_v15, %s2148_s2 }
 0x61c   :  { %1770 = vrot.lane.b32.xlu1 %v3138_v43, %s2148_s2 }
 0x61e   :  { %1716 = vrot.lane.b32.xlu0 %v3125_v33, %s2149_s30 }
 0x620   :  { %1718 = vrot.lane.b32.xlu1 %v3128_v17, %s2149_s30 }
 0x622   :  { %1720 = vrot.lane.b32.xlu0 %v3133_v15, %s2149_s30 }
 0x624   :  { %1722 = vrot.lane.b32.xlu1 %v3138_v43, %s2149_s30 }
 0x626   :  { %1732 = vrot.lane.b32.xlu0 %v3125_v33, %s2150_s4 }
 0x628   :  { %1734 = vrot.lane.b32.xlu1 %v3128_v17, %s2150_s4 }
 0x62a   :  { %1736 = vrot.lane.b32.xlu0 %v3133_v15, %s2150_s4 }
 0x62c   :  { %1738 = vrot.lane.b32.xlu1 %v3138_v43, %s2150_s4 }
 0x62e   :  { %1700 = vrot.lane.b32.xlu0 %v3125_v33, %s2151_s5 }
 0x630   :  { %1702 = vrot.lane.b32.xlu1 %v3128_v17, %s2151_s5 }
 0x632   :  { %1704 = vrot.lane.b32.xlu0 %v3133_v15, %s2151_s5 }
 0x634   :  { %1706 = vrot.lane.b32.xlu1 %v3138_v43, %s2151_s5 }
 0x636   :  { %1668 = vrot.lane.b32.xlu0 %v3125_v33, %s2152_s6 }
 0x638   :  { %1670 = vrot.lane.b32.xlu1 %v3128_v17, %s2152_s6 }
 0x63a   :  { %1672 = vrot.lane.b32.xlu0 %v3133_v15, %s2152_s6 }
 0x63c   :  { %1674 = vrot.lane.b32.xlu1 %v3138_v43, %s2152_s6 }
 0x63e   :  { %1684 = vrot.lane.b32.xlu0 %v3125_v33, %s2153_s7 }
 0x640   :  { %1686 = vrot.lane.b32.xlu1 %v3128_v17, %s2153_s7 }
 0x642   :  { %1688 = vrot.lane.b32.xlu0 %v3133_v15, %s2153_s7 }
 0x644   :  { %1690 = vrot.lane.b32.xlu1 %v3138_v43, %s2153_s7 }
 0x646   :  { %1652 = vrot.lane.b32.xlu0 %v3125_v33, %s2154_s8 }
 0x648   :  { %1654 = vrot.lane.b32.xlu1 %v3128_v17, %s2154_s8 }
 0x64a   :  { %1656 = vrot.lane.b32.xlu0 %v3133_v15, %s2154_s8 }
 0x64c   :  { %1658 = vrot.lane.b32.xlu1 %v3138_v43, %s2154_s8 }
 0x680   :  { %v1749_v50 = vpop.permute.xlu0 %1748 }
 0x682   :  { %v1751_v8 = vpop.permute.xlu1 %1750 }
 0x684   :  { %v1753_v57 = vpop.permute.xlu0 %1752 }
 0x685   :  { %v1757_v39 = vsel %vm316_vm3, %v1751_v8, %v1753_v57 }
 0x686   :  { %v1755_v31 = vpop.permute.xlu1 %1754  ;;  %v1761_v2 = vmul.f32 %v1757_v39, %v2325_v47 }
 0x687   :  { %v1756_v55 = vsel %vm316_vm3, %v1753_v57, %v1755_v31  ;;  %v1759_v54 = vsel %vm316_vm3, %v1755_v31, %v1749_v50 }
 0x688   :  { %v1765_v4 = vpop.permute.xlu0 %1764  ;;  %v1762_v32 = vmul.f32 %v1756_v55, %v2314_v42  ;;  %v3362_v42 = vld [vmem:[#allocation17_spill] sm:$0xff] }
 0x68a   :  { %v1767_v10 = vpop.permute.xlu1 %1766 }
 0x68b   :  { %v1774_v38 = vsel %vm356_vm1, %v1765_v4, %v1767_v10 }
 0x68c   :  { %v1769_v16 = vpop.permute.xlu0 %1768  ;;  %v1776_v34 = vmul.f32 %v1774_v38, %v2278_v20  ;;  %v3361_v38 = vld [vmem:[#allocation15_spill] sm:$0xff] }
 0x68d   :  { %v1773_v35 = vsel %vm356_vm1, %v1767_v10, %v1769_v16 }
 0x68e   :  { %v1777_v5 = vmul.f32 %v1773_v35, %v2286_v23  ;;  %v1771_v41 = vpop.permute.xlu1 %1770  ;;  %v1844_v27 = vsel %vm439_vm2, %v1776_v34, %v2291_v25 }
 0x68f   :  { %v1772_v0 = vsel %vm356_vm1, %v1769_v16, %v1771_v41  ;;  %v1775_v45 = vsel %vm356_vm1, %v1771_v41, %v1765_v4 }
 0x690   :  { %v1778_v30 = vmul.f32 %v1772_v0, %v2283_v22  ;;  %v1779_v3 = vmul.f32 %v1775_v45, %v2289_v24  ;;  %v1717_v52 = vpop.permute.xlu0 %1716  ;;  %v1845_v20 = vsel %vm439_vm2, %v1777_v5, %v2291_v25  ;;  %v1758_v24 = vsel %vm316_vm3, %v1749_v50, %v1751_v8  ;;  %v3359_v8 = vld [vmem:[#allocation16_spill] sm:$0xff]  ;;  %v3360_v50 = vld [vmem:[#allocation14_spill] sm:$0xff] }
 0x691   :  { %1875 = vmatprep.subr.mxu0 %v1845_v20  ;;  %v1760_v1 = vmul.f32 %v1758_v24, %v2336_v53  ;;  %v1763_v31 = vmul.f32 %v1759_v54, %v3360_v50  ;;  %v1821_v45 = vrot.slane %v1761_v2, 4 }
 0x692   :  { %v1719_v23 = vpop.permute.xlu1 %1718  ;;  %1876 = vmatpush1.msra.mxu0 %v1844_v27  ;;  %v1847_v26 = vsel %vm439_vm2, %v1779_v3, %v2291_v25  ;;  %v1846_v14 = vsel %vm439_vm2, %v1778_v30, %v2291_v25  ;;  %v1822_v30 = vrot.slane %v1762_v32, 4 }
 0x693   :  { %1946 = vmatprep.subr.mxu1 %v1847_v26  ;;  %v1726_v25 = vsel %vm236_vm4, %v1717_v52, %v1719_v23  ;;  %v1820_v5 = vrot.slane %v1760_v1, 4  ;;  %v1823_v27 = vrot.slane %v1763_v31, 4 }
 0x694   :  { %1947 = vmatpush1.msra.mxu1 %v1846_v14  ;;  %v1721_v22 = vpop.permute.xlu0 %1720  ;;  %v1728_v16 = vmul.f32 %v1726_v25, %v3361_v38 }
 0x695   :  { %v1725_v46 = vsel %vm236_vm4, %v1719_v23, %v1721_v22 }
 0x696   :  { %v1723_v37 = vpop.permute.xlu1 %1722  ;;  %v1729_v57 = vmul.f32 %v1725_v46, %v3359_v8  ;;  %v1808_v23 = vrot.slane %v1728_v16, 4 }
 0x697   :  { %v1727_v6 = vsel %vm236_vm4, %v1723_v37, %v1717_v52  ;;  %v1724_v4 = vsel %vm236_vm4, %v1721_v22, %v1723_v37 }
 0x698   :  { %v1733_v9 = vpop.permute.xlu0 %1732  ;;  %v1731_v34 = vmul.f32 %v1727_v6, %v2328_v48  ;;  %v1730_v47 = vmul.f32 %v1724_v4, %v2345_v56  ;;  %v1809_v3 = vrot.slane %v1729_v57, 4 }
 0x69a   :  { %v1735_v10 = vpop.permute.xlu1 %1734  ;;  %v1811_v56 = vrot.slane %v1731_v34, 4  ;;  %v1810_v39 = vrot.slane %v1730_v47, 4  ;;  %v1837_v46 = vsel %vm439_vm2, %v3128_v17, %v1809_v3 }
 0x69b   :  { %v1742_v53 = vsel %vm276_vm5, %v1733_v9, %v1735_v10 }
 0x69c   :  { %v1737_v35 = vpop.permute.xlu0 %1736  ;;  %v1744_v41 = vmul.f32 %v1742_v53, %v3362_v42  ;;  %v1838_v1 = vsel %vm439_vm2, %v3133_v15, %v1810_v39 }
 0x69d   :  { %v1741_v0 = vsel %vm276_vm5, %v1735_v10, %v1737_v35 }
 0x69e   :  { %v1745_v52 = vmul.f32 %v1741_v0, %v2370_v18  ;;  %v1739_v20 = vpop.permute.xlu1 %1738  ;;  %v1840_v18 = vsel %vm439_vm2, %v1744_v41, %v1820_v5 }
 0x69f   :  { %v1740_v48 = vsel %vm276_vm5, %v1737_v35, %v1739_v20  ;;  %v1743_v26 = vsel %vm276_vm5, %v1739_v20, %v1733_v9  ;;  %v1839_v9 = vsel %vm439_vm2, %v3138_v43, %v1811_v56 }
 0x6a0   :  { %v1746_v14 = vmul.f32 %v1740_v48, %v2373_v19  ;;  %v1747_v22 = vmul.f32 %v1743_v26, %v2364_v7  ;;  %v1701_v24 = vpop.permute.xlu0 %1700  ;;  %v1841_v37 = vsel %vm439_vm2, %v1745_v52, %v1821_v45  ;;  %v1836_v7 = vsel %vm439_vm2, %v3125_v33, %v1808_v23 }
 0x6a1   :  { %1877 = vmatprep.subr.mxu0 %v1841_v37 }
 0x6a2   :  { %v1703_v55 = vpop.permute.xlu1 %1702  ;;  %1878 = vmatpush1.msra.mxu0 %v1840_v18  ;;  %v1843_v54 = vsel %vm439_vm2, %v1747_v22, %v1823_v27  ;;  %v1842_v25 = vsel %vm439_vm2, %v1746_v14, %v1822_v30 }
 0x6a3   :  { %1879 = vmatprep.subr.mxu0 %v1837_v46  ;;  %1948 = vmatprep.subr.mxu1 %v1843_v54  ;;  %v1710_v8 = vsel %vm196_vm6, %v1701_v24, %v1703_v55 }
 0x6a4   :  { %1880 = vmatpush1.msra.mxu0 %v1836_v7  ;;  %1949 = vmatpush1.msra.mxu1 %v1842_v25  ;;  %v1705_v19 = vpop.permute.xlu0 %1704  ;;  %v1713_v33 = vmul.f32 %v1710_v8, %v2402_v13 }
 0x6a5   :  { %1950 = vmatprep.subr.mxu1 %v1839_v9  ;;  %v1709_v15 = vsel %vm196_vm6, %v1703_v55, %v1705_v19  ;;  %v1849_v9 = vld [vmem:[#allocation5 + $0x10] sm:$0xf] }
 0x6a6   :  { %v1707_v17 = vpop.permute.xlu1 %1706  ;;  %1951 = vmatpush1.msra.mxu1 %v1838_v1  ;;  %v1797_v16 = vrot.slane %v1713_v33, 4  ;;  %v1714_v35 = vmul.f32 %v1709_v15, %v2412_v28  ;;  %v2052_v33 = vld [vmem:[#allocation2 + $0x8] sm:$0xff] }
 0x6a7   :  { %v1711_v4 = vsel %vm196_vm6, %v1707_v17, %v1701_v24  ;;  %v1708_v43 = vsel %vm196_vm6, %v1705_v19, %v1707_v17 }
 0x6a8   :  { %v1669_v6 = vpop.permute.xlu0 %1668  ;;  %v1712_v31 = vmul.f32 %v1711_v4, %v2407_v21  ;;  %v1715_v53 = vmul.f32 %v1708_v43, %v2415_v29  ;;  %v1798_v20 = vrot.slane %v1714_v35, 4 }
 0x6aa   :  { %v1671_v2 = vpop.permute.xlu1 %1670  ;;  %v1796_v41 = vrot.slane %v1712_v31, 4  ;;  %v1799_v28 = vrot.slane %v1715_v53, 4 }
 0x6ab   :  { %v1678_v5 = vsel %vm116_vm7, %v1669_v6, %v1671_v2 }
 0x6ac   :  { %v1673_v32 = vpop.permute.xlu0 %1672  ;;  %v1681_v45 = vmul.f32 %v1678_v5, %v2432_v40 }
 0x6ad   :  { %v1677_v23 = vsel %vm116_vm7, %v1671_v2, %v1673_v32 }
 0x6ae   :  { %v1675_v57 = vpop.permute.xlu1 %1674  ;;  %v1785_v56 = vrot.slane %v1681_v45, 4  ;;  %v1682_v39 = vmul.f32 %v1677_v23, %v2452_v61 }
 0x6af   :  { %v1676_v27 = vsel %vm116_vm7, %v1673_v32, %v1675_v57  ;;  %v3363_v32 = vld [vmem:[#allocation13_spill] sm:$0xff] }
 0x6b0   :  { %v1685_v10 = vpop.permute.xlu0 %1684  ;;  %v1683_v22 = vmul.f32 %v1676_v27, %v2455_v62  ;;  %v1786_v19 = vrot.slane %v1682_v39, 4 }
 0x6b2   :  { %v1687_v50 = vpop.permute.xlu1 %1686 }
 0x6b3   :  { %v1694_v38 = vsel %vm156_vm8, %v1685_v10, %v1687_v50 }
 0x6b4   :  { %v1697_v13 = vmul.f32 %v1694_v38, %v2425_v36  ;;  %v1689_v34 = vpop.permute.xlu0 %1688 }
 0x6b5   :  { %v1693_v47 = vsel %vm156_vm8, %v1687_v50, %v1689_v34 }
 0x6b6   :  { %v1691_v42 = vpop.permute.xlu1 %1690  ;;  %v1833_v21 = vsel %vm439_vm2, %v1697_v13, %v1797_v16  ;;  %v1698_v0 = vmul.f32 %v1693_v47, %v2446_v58  ;;  %v1679_v58 = vsel %vm116_vm7, %v1675_v57, %v1669_v6  ;;  %v2051_v6 = vld [vmem:[#allocation2] sm:$0xff] }
 0x6b7   :  { %v1692_v29 = vsel %vm156_vm8, %v1689_v34, %v1691_v42  ;;  %v1695_v36 = vsel %vm156_vm8, %v1691_v42, %v1685_v10  ;;  %1881 = vmatprep.subr.mxu0 %v1833_v21  ;;  %v1680_v14 = vmul.f32 %v1679_v58, %v2437_v49  ;;  %v3364_v10 = vld [vmem:[#allocation12_spill] sm:$0xff] }
 0x6b8   :  { %v1696_v30 = vmul.f32 %v1695_v36, %v2442_v51  ;;  %v1699_v3 = vmul.f32 %v1692_v29, %v2449_v59  ;;  %v1653_v52 = vpop.permute.xlu0 %1652  ;;  %v1834_v59 = vsel %vm439_vm2, %v1698_v0, %v1798_v20 }
 0x6b9   :  { %v1784_v62 = vrot.slane %v1680_v14, 4 }
 0x6ba   :  { %v1655_v48 = vpop.permute.xlu1 %1654  ;;  %v1832_v26 = vsel %vm439_vm2, %v1696_v30, %v1796_v41  ;;  %v1835_v40 = vsel %vm439_vm2, %v1699_v3, %v1799_v28 }
 0x6bb   :  { %v1662_v51 = vsel %vm77_vm9, %v1653_v52, %v1655_v48  ;;  %1882 = vmatpush1.msra.mxu0 %v1832_v26  ;;  %1952 = vmatprep.subr.mxu1 %v1835_v40 }
 0x6bc   :  { %v1665_v24 = vmul.f32 %v1662_v51, %v2458_v63  ;;  %1953 = vmatpush1.msra.mxu1 %v1834_v59  ;;  %v1657_v37 = vpop.permute.xlu0 %1656  ;;  %v1787_v63 = vrot.slane %v1683_v22, 4 }
 0x6bd   :  { %v1661_v18 = vsel %vm77_vm9, %v1655_v48, %v1657_v37 }
 0x6be   :  { %v1659_v55 = vpop.permute.xlu1 %1658  ;;  %v1829_v46 = vsel %vm439_vm2, %v1665_v24, %v1785_v56  ;;  %v1666_v54 = vmul.f32 %v1661_v18, %v2488_v12 }
 0x6bf   :  { %v1660_v25 = vsel %vm77_vm9, %v1657_v37, %v1659_v55  ;;  %v1663_v49 = vsel %vm77_vm9, %v1659_v55, %v1653_v52  ;;  %1883 = vmatprep.subr.mxu0 %v1829_v46 }
 0x6c0   :  { %v1664_v7 = vmul.f32 %v1663_v49, %v2478_v44  ;;  %v1667_v61 = vmul.f32 %v1660_v25, %v2493_v60  ;;  %v1830_v12 = vsel %vm439_vm2, %v1666_v54, %v1786_v19 }
 0x6c2   :  { %v1828_v1 = vsel %vm439_vm2, %v1664_v7, %v1784_v62  ;;  %v1831_v17 = vsel %vm439_vm2, %v1667_v61, %v1787_v63 }
 0x6c3   :  { %1884 = vmatpush1.msra.mxu0 %v1828_v1  ;;  %1954 = vmatprep.subr.mxu1 %v1831_v17 }
 0x6c4   :  { %2030 = vmatmul.mubr.msk.f32.vlgmr.msra.gmra.mxu0 %vm461_vm10, %v1849_v9  ;;  %1955 = vmatpush1.msra.mxu1 %v1830_v12 }
 0x6c5   :  { %2031 = vmatmul.mubr.msk.f32.vlgmr.msra.gmra.mxu1 %vm461_vm10, %v1849_v9 }
 0x784   :  { %v1919_v11 = vpop.f32.mrf.mxu0 }
 0x785   :  { %v1920_v44 = vadd.f32 %v2051_v6, %v1919_v11  ;;  %v1990_v2 = vpop.f32.mrf.mxu1 }
 0x786   :  { %v1921_v60 = vpop.f32.mrf.mxu0  ;;  %v1991_v4 = vadd.f32 %v2052_v33, %v1990_v2 }
 0x787   :  { %v1922_v8 = vadd.f32 %v1921_v60, %v3363_v32  ;;  %v1992_v57 = vpop.f32.mrf.mxu1 }
 0x788   :  { %v1993_v43 = vadd.f32 %v1992_v57, %v3364_v10 }
 0x789   :  { %v1999_v15 = vcombine.low %v1920_v44, %v1922_v8 }
 0x78a   :  { %v2000_v50 = vcombine.low %v1991_v4, %v1993_v43 }
 0x78b   :  { %2003 = vst [vmem:[#allocation8] sm:$0xff] %v1999_v15 }
 0x78c   :  { %2004 = vst [vmem:[#allocation8 + $0x8] sm:$0xff] %v2000_v50 }
 0x78d   :  { %2124 = shalt.err (!%p2121_p5)
}
 0x78e   :  { %2014 = dma.vmem_to_hbm [thread:$0]  %s2012_s10, 256, %s3334_s3, [#allocation4]  }
 0x78f   :  { %2137 = dma.done.wait [#allocation4], 256  }
 0x790   :  { %2138 = vsyncadd [#allocation4], 4294967040 }
 0x791   :  { %2018 = vsyncpa [#allocation3], 1 }
 0x792   :  { %2019 = vsyncpa [#allocation6], 1 }
 0x793   :  { %2020 = vsyncpa [#allocation4], 1 }

</bundles_post_ra>
